<compile_context>
chip_gen: v7x
topology: tpu7x:2x2x1
jax: 0.10.0
libtpu: 0.0.40
codegen_flags: <defaults>
</compile_context>

<pallas_src>
import functools

import jax
import jax.numpy as jnp
from jax import lax
from jax.experimental import pallas as pl
from jax.experimental.pallas import tpu as pltpu


def _layer_norm(x, gamma, beta, eps=1e-6):
    mean = jnp.mean(x, axis=-1, keepdims=True)
    var = jnp.mean((x - mean) ** 2, axis=-1, keepdims=True)
    return (x - mean) * lax.rsqrt(var + eps) * gamma + beta


def encoder_layer_kernel(x_ref, wqkv_ref, wfc_ref,
                         ln1g_ref, ln1b_ref,
                         w1_ref, b1_ref, w2_ref, b2_ref,
                         ln2g_ref, ln2b_ref,
                         out_ref, attn_ref,
                         o_acc_ref,
                         *, hg, d_k, d_v, ffn_chunk):
    g = pl.program_id(1)                              # head-group index (reduction axis)

    @pl.when(g == 0)
    def _():
        o_acc_ref[...] = jnp.zeros_like(o_acc_ref)

    x = x_ref[0]                                      # (L, D) f32 (residuals stay f32)
    L = x.shape[0]
    xb = x.astype(jnp.bfloat16)

    # ---- fused Q|K|V projection for this head group: one wide bf16 matmul, f32 accum ----
    # wq columns are pre-scaled by 1/temperature on the host.
    qkv = jnp.dot(xb, wqkv_ref[...], preferred_element_type=jnp.float32)   # (L, hg*(2dk+dv))
    q = qkv[:, :hg * d_k]
    k = qkv[:, hg * d_k:2 * hg * d_k]
    v = qkv[:, 2 * hg * d_k:]

    # Head-major layout (hg, L, d) once, in bf16 (half the relayout bytes);
    # all attention matmuls are head-batched.
    qh = jnp.transpose(q.astype(jnp.bfloat16).reshape(L, hg, d_k), (1, 0, 2))
    kh = jnp.transpose(k.astype(jnp.bfloat16).reshape(L, hg, d_k), (1, 0, 2))
    vh = jnp.transpose(v.astype(jnp.bfloat16).reshape(L, hg, d_v), (1, 0, 2))

    scores = jnp.einsum("hqd,hkd->hqk", qh, kh,
                        preferred_element_type=jnp.float32)                # (hg, L, L) f32
    m = jnp.max(scores, axis=-1, keepdims=True)
    e = jnp.exp(scores - m)
    denom = jnp.sum(e, axis=-1, keepdims=True)
    attn = e * pl.reciprocal(denom, approx=True)                           # softmax, f32
    attn_ref[0] = attn.astype(attn_ref.dtype)                              # one bf16 store

    ctx = jnp.einsum("hqk,hkd->hqd", attn.astype(jnp.bfloat16), vh,
                     preferred_element_type=jnp.float32)                   # (hg, L, d_v)
    ctx = jnp.transpose(ctx.astype(jnp.bfloat16), (1, 0, 2)).reshape(L, hg * d_v)
    o_acc_ref[...] += jnp.dot(ctx, wfc_ref[...],
                              preferred_element_type=jnp.float32)          # partial fc out

    # ---- Epilogue on the last head group: residual + LN1 + FFN (chunked) + LN2 ----
    @pl.when(g == pl.num_programs(1) - 1)
    def _():
        o = o_acc_ref[...] + x                                             # residual (f32)
        o = _layer_norm(o, ln1g_ref[...], ln1b_ref[...])
        o_bf = o.astype(jnp.bfloat16)

        d_inner = w1_ref.shape[1]
        n_chunks = d_inner // ffn_chunk
        ffn = jnp.zeros(o.shape, jnp.float32)
        for c in range(n_chunks):                     # static unroll; bounds (L, d_inner)
            lo = c * ffn_chunk
            hi = lo + ffn_chunk
            h1 = jnp.dot(o_bf, w1_ref[:, lo:hi],
                         preferred_element_type=jnp.float32) + b1_ref[:, lo:hi]
            h1 = jnp.maximum(h1, 0.0)                                      # ReLU
            ffn = ffn + jnp.dot(h1.astype(jnp.bfloat16), w2_ref[lo:hi, :],
                                preferred_element_type=jnp.float32)
        ffn = ffn + b2_ref[...]

        y = _layer_norm(ffn + o, ln2g_ref[...], ln2b_ref[...])
        out_ref[0] = y.astype(out_ref.dtype)


def encoder_layer(x, params, *, n_head, d_k, d_v, heads_per_group=None,
                  ffn_chunk=None, vmem_limit_bytes=48 * 1024 * 1024):
    B, L, D = x.shape
    d_inner = params["w1"].shape[1]
    if heads_per_group is None:
        heads_per_group = n_head
    assert n_head % heads_per_group == 0
    hg = heads_per_group
    n_groups = n_head // hg
    qkv_w = hg * (2 * d_k + d_v)
    if n_groups > 1:
        # Blocked weight tiles must satisfy the (8, 128) TPU tiling constraint.
        assert qkv_w % 128 == 0, "hg*(2*d_k+d_v) must be a multiple of 128 when n_groups > 1"
        assert (hg * d_v) % 8 == 0, "hg*d_v must be a multiple of 8 when n_groups > 1"
    if ffn_chunk is None:
        ffn_chunk = min(d_inner, 512)
    assert d_inner % ffn_chunk == 0
    if ffn_chunk != d_inner:
        assert ffn_chunk % 128 == 0, "ffn_chunk must be a multiple of 128 when chunking"

    temperature = d_k ** 0.5
    bf = jnp.bfloat16

    # Host-side prep: fold 1/temperature into wq; fuse wq|wk|wv per head group so each
    # grid step loads one contiguous (D, qkv_w) bf16 block; bf16 weights for the MXU
    # (also halves weight DMA). Biases and LayerNorm params stay f32.
    wq = (params["wq"] * (1.0 / temperature)).astype(bf).reshape(D, n_groups, hg * d_k)
    wk = params["wk"].astype(bf).reshape(D, n_groups, hg * d_k)
    wv = params["wv"].astype(bf).reshape(D, n_groups, hg * d_v)
    wqkv = jnp.concatenate([wq, wk, wv], axis=-1).reshape(D, n_groups * qkv_w)
    wfc = params["wfc"].astype(bf)
    w1 = params["w1"].astype(bf)
    w2 = params["w2"].astype(bf)
    ln1g, ln1b = params["ln1_g"], params["ln1_b"]
    b1, b2 = params["b1"], params["b2"]
    ln2g, ln2b = params["ln2_g"], params["ln2_b"]

    weights = [wqkv, wfc, ln1g, ln1b, w1, b1, w2, b2, ln2g, ln2b]

    kernel = functools.partial(encoder_layer_kernel, hg=hg, d_k=d_k, d_v=d_v,
                               ffn_chunk=ffn_chunk)

    # Grid-invariant blocks: single-buffer (constant index map -> no pipelining benefit).
    single = pl.Buffered(1)

    in_specs = [
        pl.BlockSpec((1, L, D), lambda b, g: (b, 0, 0)),                  # x
        pl.BlockSpec((D, qkv_w), lambda b, g: (0, g)),                    # fused wq|wk|wv
        pl.BlockSpec((hg * d_v, D), lambda b, g: (g, 0)),                 # wfc
        pl.BlockSpec((1, D), lambda b, g: (0, 0), pipeline_mode=single),          # ln1_g
        pl.BlockSpec((1, D), lambda b, g: (0, 0), pipeline_mode=single),          # ln1_b
        pl.BlockSpec((D, d_inner), lambda b, g: (0, 0), pipeline_mode=single),    # w1
        pl.BlockSpec((1, d_inner), lambda b, g: (0, 0), pipeline_mode=single),    # b1
        pl.BlockSpec((d_inner, D), lambda b, g: (0, 0), pipeline_mode=single),    # w2
        pl.BlockSpec((1, D), lambda b, g: (0, 0), pipeline_mode=single),          # b2
        pl.BlockSpec((1, D), lambda b, g: (0, 0), pipeline_mode=single),          # ln2_g
        pl.BlockSpec((1, D), lambda b, g: (0, 0), pipeline_mode=single),          # ln2_b
    ]
    out_specs = [
        pl.BlockSpec((1, L, D), lambda b, g: (b, 0, 0)),                  # out (resident over g)
        pl.BlockSpec((1, hg, L, L), lambda b, g: (b, g, 0, 0)),           # attn (per head group)
    ]

    return pl.pallas_call(
        kernel,
        out_shape=(jax.ShapeDtypeStruct((B, L, D), jnp.float32),
                   jax.ShapeDtypeStruct((B, n_head, L, L), jnp.bfloat16)),   # bf16 attn out
        grid=(B, n_groups),
        in_specs=in_specs,
        out_specs=out_specs,
        scratch_shapes=[pltpu.VMEM((L, D), jnp.float32)],                 # fc-output accumulator
        compiler_params=pltpu.CompilerParams(
            dimension_semantics=("parallel", "arbitrary"),
            vmem_limit_bytes=vmem_limit_bytes),
    )(x, *weights)


def encoder_layer_ref(x, params, *, n_head, d_k, d_v):
    """Plain-JAX f32 reference mirroring the PyTorch forward (eval mode)."""
    B, L, D = x.shape
    temperature = d_k ** 0.5
    q = (x @ params["wq"]).reshape(B, L, n_head, d_k).transpose(0, 2, 1, 3)
    k = (x @ params["wk"]).reshape(B, L, n_head, d_k).transpose(0, 2, 1, 3)
    v = (x @ params["wv"]).reshape(B, L, n_head, d_v).transpose(0, 2, 1, 3)
    scores = jnp.einsum("bhqd,bhkd->bhqk", q / temperature, k)
    attn = jax.nn.softmax(scores, axis=-1)
    o = jnp.einsum("bhqk,bhkd->bhqd", attn, v)
    o = o.transpose(0, 2, 1, 3).reshape(B, L, n_head * d_v)
    o = o @ params["wfc"] + x
    o = _layer_norm(o, params["ln1_g"], params["ln1_b"])
    h1 = jax.nn.relu(o @ params["w1"] + params["b1"])
    y = h1 @ params["w2"] + params["b2"] + o
    y = _layer_norm(y, params["ln2_g"], params["ln2_b"])
    return y, attn


if __name__ == "__main__":
    # Small shapes consistent with the module.
    B, L = 2, 8
    d_model, d_inner, n_head, d_k, d_v = 32, 64, 4, 8, 8

    key = jax.random.PRNGKey(0)
    ks = jax.random.split(key, 10)

    def init(k, shape, scale=0.1):
        return (scale * jax.random.normal(k, shape)).astype(jnp.float32)

    params = {
        "wq": init(ks[0], (d_model, n_head * d_k)),
        "wk": init(ks[1], (d_model, n_head * d_k)),
        "wv": init(ks[2], (d_model, n_head * d_v)),
        "wfc": init(ks[3], (n_head * d_v, d_model)),
        "ln1_g": jnp.ones((1, d_model), jnp.float32),
        "ln1_b": jnp.zeros((1, d_model), jnp.float32),
        "w1": init(ks[4], (d_model, d_inner)),
        "b1": init(ks[5], (1, d_inner)),
        "w2": init(ks[6], (d_inner, d_model)),
        "b2": init(ks[7], (1, d_model)),
        "ln2_g": jnp.ones((1, d_model), jnp.float32),
        "ln2_b": jnp.zeros((1, d_model), jnp.float32),
    }

    x = init(ks[8], (B, L, d_model), scale=1.0)

    out, attn = encoder_layer(x, params, n_head=n_head, d_k=d_k, d_v=d_v)
    out = jax.block_until_ready(out)
    attn = jax.block_until_ready(attn)

    out_r, attn_r = encoder_layer_ref(x, params, n_head=n_head, d_k=d_k, d_v=d_v)
    assert out.shape == (B, L, d_model)
    assert attn.shape == (B, n_head, L, L)
    # bf16 matmul operands (f32 accumulation) and bf16 attn output -> loosened tolerances
    # vs. the f32 reference.
    assert jnp.allclose(out, out_r, atol=5e-2, rtol=5e-2)
    assert jnp.allclose(attn.astype(jnp.float32), attn_r, atol=1e-2, rtol=5e-2)

    print("KERNEL_OK")
</pallas_src>

<mosaic_0001>
module attributes {stable_mosaic.version = 11 : i64} {
  func.func @encoder_layer_kernel(%arg0: i32, %arg1: i32, %arg2: memref<1x8x32xf32, #tpu.memory_space<vmem>>, %arg3: memref<32x96xbf16, #tpu.memory_space<vmem>>, %arg4: memref<32x32xbf16, #tpu.memory_space<vmem>>, %arg5: memref<1x32xf32, #tpu.memory_space<vmem>>, %arg6: memref<1x32xf32, #tpu.memory_space<vmem>>, %arg7: memref<32x64xbf16, #tpu.memory_space<vmem>>, %arg8: memref<1x64xf32, #tpu.memory_space<vmem>>, %arg9: memref<64x32xbf16, #tpu.memory_space<vmem>>, %arg10: memref<1x32xf32, #tpu.memory_space<vmem>>, %arg11: memref<1x32xf32, #tpu.memory_space<vmem>>, %arg12: memref<1x32xf32, #tpu.memory_space<vmem>>, %arg13: memref<1x8x32xf32, #tpu.memory_space<vmem>>, %arg14: memref<1x4x8x8xbf16, #tpu.memory_space<vmem>>, %arg15: memref<8x32xf32, #tpu.memory_space<vmem>>) attributes {dimension_semantics = [#tpu.dimension_semantics<parallel>, #tpu.dimension_semantics<arbitrary>], iteration_bounds = array<i64: 2, 1>, scalar_prefetch = 0 : i64, scratch_operands = 1 : i64, tpu.core_type = #tpu.core_type<tc>, window_params = [{transform_indices = @transform_0, window_bounds = array<i64: 1, 8, 32>}, {transform_indices = @transform_1, window_bounds = array<i64: 32, 96>}, {transform_indices = @transform_2, window_bounds = array<i64: 32, 32>}, {pipeline_mode = #tpu.pipeline_mode<synchronous>, transform_indices = @transform_3, window_bounds = array<i64: 1, 32>}, {pipeline_mode = #tpu.pipeline_mode<synchronous>, transform_indices = @transform_4, window_bounds = array<i64: 1, 32>}, {pipeline_mode = #tpu.pipeline_mode<synchronous>, transform_indices = @transform_5, window_bounds = array<i64: 32, 64>}, {pipeline_mode = #tpu.pipeline_mode<synchronous>, transform_indices = @transform_6, window_bounds = array<i64: 1, 64>}, {pipeline_mode = #tpu.pipeline_mode<synchronous>, transform_indices = @transform_7, window_bounds = array<i64: 64, 32>}, {pipeline_mode = #tpu.pipeline_mode<synchronous>, transform_indices = @transform_8, window_bounds = array<i64: 1, 32>}, {pipeline_mode = #tpu.pipeline_mode<synchronous>, transform_indices = @transform_9, window_bounds = array<i64: 1, 32>}, {pipeline_mode = #tpu.pipeline_mode<synchronous>, transform_indices = @transform_10, window_bounds = array<i64: 1, 32>}, {transform_indices = @transform_11, window_bounds = array<i64: 1, 8, 32>}, {transform_indices = @transform_12, window_bounds = array<i64: 1, 4, 8, 8>}]} {
    %c0_i32 = arith.constant 0 : i32
    %0 = arith.cmpi eq, %arg1, %c0_i32 : i32
    %1 = arith.extui %0 : i1 to i32
    %c0_i32_0 = arith.constant 0 : i32
    %2 = arith.cmpi ne, %1, %c0_i32_0 : i32
    scf.if %2 {
      %cst_22 = arith.constant 0.000000e+00 : f32
      %48 = vector.broadcast %cst_22 : f32 to vector<8x32xf32>
      %c0_23 = arith.constant 0 : index
      %c0_24 = arith.constant 0 : index
      %49 = vector.load %arg15[%c0_23, %c0_24] : memref<8x32xf32, #tpu.memory_space<vmem>>, vector<8x32xf32>
      tpu.vector_store %arg15[%c0_23, %c0_24], %48 {strides = array<i32>} : memref<8x32xf32, #tpu.memory_space<vmem>>, vector<8x32xf32>,
    } else {
    }
    %c0 = arith.constant 0 : index
    %c0_1 = arith.constant 0 : index
    %c0_2 = arith.constant 0 : index
    %3 = vector.load %arg2[%c0, %c0_1, %c0_2] : memref<1x8x32xf32, #tpu.memory_space<vmem>>, vector<1x8x32xf32>
    %4 = vector.shape_cast %3 : vector<1x8x32xf32> to vector<8x32xf32>
    %5 = arith.truncf %4 : vector<8x32xf32> to vector<8x32xbf16>
    %c0_3 = arith.constant 0 : index
    %c0_4 = arith.constant 0 : index
    %6 = vector.load %arg3[%c0_3, %c0_4] : memref<32x96xbf16, #tpu.memory_space<vmem>>, vector<32x96xbf16>
    %cst = arith.constant dense<0.000000e+00> : vector<8x96xf32>
    %7 = tpu.matmul %5, %6, %cst {dimension_numbers = #tpu.dot_dimension_numbers<[1], [0], [0], [1], [0, 0, 1, 1], [], []>} : vector<8x32xbf16>, vector<32x96xbf16>, vector<8x96xf32> -> vector<8x96xf32>
    %8 = vector.extract_strided_slice %7 {offsets = [0, 0], sizes = [8, 32], strides = [1, 1]} : vector<8x96xf32> to vector<8x32xf32>
    %9 = vector.extract_strided_slice %7 {offsets = [0, 32], sizes = [8, 32], strides = [1, 1]} : vector<8x96xf32> to vector<8x32xf32>
    %10 = vector.extract_strided_slice %7 {offsets = [0, 64], sizes = [8, 32], strides = [1, 1]} : vector<8x96xf32> to vector<8x32xf32>
    %11 = arith.truncf %8 : vector<8x32xf32> to vector<8x32xbf16>
    %12 = vector.shape_cast %11 : vector<8x32xbf16> to vector<8x4x8xbf16>
    %13 = tpu.transpose %12, [1, 0, 2] : vector<8x4x8xbf16> -> vector<4x8x8xbf16>
    %14 = arith.truncf %9 : vector<8x32xf32> to vector<8x32xbf16>
    %15 = vector.shape_cast %14 : vector<8x32xbf16> to vector<8x4x8xbf16>
    %16 = tpu.transpose %15, [1, 0, 2] : vector<8x4x8xbf16> -> vector<4x8x8xbf16>
    %17 = arith.truncf %10 : vector<8x32xf32> to vector<8x32xbf16>
    %18 = vector.shape_cast %17 : vector<8x32xbf16> to vector<8x4x8xbf16>
    %19 = tpu.transpose %18, [1, 0, 2] : vector<8x4x8xbf16> -> vector<4x8x8xbf16>
    "tpu.trace_start"() <{level = 10 : i32, message = "hqd,hkd->hqk"}> : () -> ()
    %cst_5 = arith.constant dense<0.000000e+00> : vector<4x8x8xf32>
    %20 = tpu.matmul %13, %16, %cst_5 {dimension_numbers = #tpu.dot_dimension_numbers<[2], [2], [1], [1], [0, 0, 0, 1, 1, 1], [0], [0]>} : vector<4x8x8xbf16>, vector<4x8x8xbf16>, vector<4x8x8xf32> -> vector<4x8x8xf32>
    "tpu.trace_stop"() : () -> ()
    %cst_6 = arith.constant dense<0xFF800000> : vector<4x8xf32>
    %21 = vector.multi_reduction <maximumf>, %20, %cst_6 [2] : vector<4x8x8xf32> to vector<4x8xf32>
    %22 = vector.shape_cast %21 : vector<4x8xf32> to vector<4x8x1xf32>
    %23 = vector.broadcast %22 : vector<4x8x1xf32> to vector<4x8x8xf32>
    %24 = arith.subf %20, %23 : vector<4x8x8xf32>
    %25 = math.exp %24 : vector<4x8x8xf32>
    %cst_7 = arith.constant dense<0.000000e+00> : vector<4x8xf32>
    %26 = vector.multi_reduction <add>, %25, %cst_7 [2] : vector<4x8x8xf32> to vector<4x8xf32>
    %27 = vector.shape_cast %26 : vector<4x8xf32> to vector<4x8x1xf32>
    %28 = tpu.reciprocal %27 {approx = true} : vector<4x8x1xf32> -> vector<4x8x1xf32>
    %29 = vector.broadcast %28 : vector<4x8x1xf32> to vector<4x8x8xf32>
    %30 = arith.mulf %25, %29 : vector<4x8x8xf32>
    %31 = arith.truncf %30 : vector<4x8x8xf32> to vector<4x8x8xbf16>
    %c0_8 = arith.constant 0 : index
    %c0_9 = arith.constant 0 : index
    %c0_10 = arith.constant 0 : index
    %c0_11 = arith.constant 0 : index
    %32 = vector.load %arg14[%c0_8, %c0_9, %c0_10, %c0_11] : memref<1x4x8x8xbf16, #tpu.memory_space<vmem>>, vector<1x4x8x8xbf16>
    %33 = vector.shape_cast %32 : vector<1x4x8x8xbf16> to vector<4x8x8xbf16>
    %34 = vector.shape_cast %31 : vector<4x8x8xbf16> to vector<1x4x8x8xbf16>
    tpu.vector_store %arg14[%c0_8, %c0_9, %c0_10, %c0_11], %34 {strides = array<i32>} : memref<1x4x8x8xbf16, #tpu.memory_space<vmem>>, vector<1x4x8x8xbf16>,
    %35 = arith.truncf %30 : vector<4x8x8xf32> to vector<4x8x8xbf16>
    "tpu.trace_start"() <{level = 10 : i32, message = "hqk,hkd->hqd"}> : () -> ()
    %cst_12 = arith.constant dense<0.000000e+00> : vector<4x8x8xf32>
    %36 = tpu.matmul %35, %19, %cst_12 {dimension_numbers = #tpu.dot_dimension_numbers<[2], [1], [1], [2], [0, 0, 0, 1, 1, 2], [0], [0]>} : vector<4x8x8xbf16>, vector<4x8x8xbf16>, vector<4x8x8xf32> -> vector<4x8x8xf32>
    "tpu.trace_stop"() : () -> ()
    %37 = arith.truncf %36 : vector<4x8x8xf32> to vector<4x8x8xbf16>
    %38 = tpu.transpose %37, [1, 0, 2] : vector<4x8x8xbf16> -> vector<8x4x8xbf16>
    %39 = vector.shape_cast %38 : vector<8x4x8xbf16> to vector<8x32xbf16>
    %c0_13 = arith.constant 0 : index
    %c0_14 = arith.constant 0 : index
    %40 = vector.load %arg15[%c0_13, %c0_14] : memref<8x32xf32, #tpu.memory_space<vmem>>, vector<8x32xf32>
    %c0_15 = arith.constant 0 : index
    %c0_16 = arith.constant 0 : index
    %41 = vector.load %arg4[%c0_15, %c0_16] : memref<32x32xbf16, #tpu.memory_space<vmem>>, vector<32x32xbf16>
    %cst_17 = arith.constant dense<0.000000e+00> : vector<8x32xf32>
    %42 = tpu.matmul %39, %41, %cst_17 {dimension_numbers = #tpu.dot_dimension_numbers<[1], [0], [0], [1], [0, 0, 1, 1], [], []>} : vector<8x32xbf16>, vector<32x32xbf16>, vector<8x32xf32> -> vector<8x32xf32>
    %43 = arith.addf %40, %42 : vector<8x32xf32>
    %c0_18 = arith.constant 0 : index
    %c0_19 = arith.constant 0 : index
    %44 = vector.load %arg15[%c0_18, %c0_19] : memref<8x32xf32, #tpu.memory_space<vmem>>, vector<8x32xf32>
    tpu.vector_store %arg15[%c0_18, %c0_19], %43 {strides = array<i32>} : memref<8x32xf32, #tpu.memory_space<vmem>>, vector<8x32xf32>,
    %c0_i32_20 = arith.constant 0 : i32
    %45 = arith.cmpi eq, %arg1, %c0_i32_20 : i32
    %46 = arith.extui %45 : i1 to i32
    %c0_i32_21 = arith.constant 0 : i32
    %47 = arith.cmpi ne, %46, %c0_i32_21 : i32
    scf.if %47 {
      %c0_22 = arith.constant 0 : index
      %c0_23 = arith.constant 0 : index
      %48 = vector.load %arg15[%c0_22, %c0_23] : memref<8x32xf32, #tpu.memory_space<vmem>>, vector<8x32xf32>
      %49 = arith.addf %48, %4 : vector<8x32xf32>
      %c0_24 = arith.constant 0 : index
      %c0_25 = arith.constant 0 : index
      %50 = vector.load %arg5[%c0_24, %c0_25] : memref<1x32xf32, #tpu.memory_space<vmem>>, vector<1x32xf32>
      %c0_26 = arith.constant 0 : index
      %c0_27 = arith.constant 0 : index
      %51 = vector.load %arg6[%c0_26, %c0_27] : memref<1x32xf32, #tpu.memory_space<vmem>>, vector<1x32xf32>
      %cst_28 = arith.constant dense<0.000000e+00> : vector<8xf32>
      %52 = vector.multi_reduction <add>, %49, %cst_28 [1] : vector<8x32xf32> to vector<8xf32>
      %53 = vector.shape_cast %52 : vector<8xf32> to vector<8x1xf32>
      %cst_29 = arith.constant 3.200000e+01 : f32
      %54 = vector.broadcast %cst_29 : f32 to vector<8x1xf32>
      %55 = arith.divf %53, %54 : vector<8x1xf32>
      %56 = vector.broadcast %55 : vector<8x1xf32> to vector<8x32xf32>
      %57 = arith.subf %49, %56 : vector<8x32xf32>
      %58 = arith.mulf %57, %57 : vector<8x32xf32>
      %cst_30 = arith.constant dense<0.000000e+00> : vector<8xf32>
      %59 = vector.multi_reduction <add>, %58, %cst_30 [1] : vector<8x32xf32> to vector<8xf32>
      %60 = vector.shape_cast %59 : vector<8xf32> to vector<8x1xf32>
      %cst_31 = arith.constant 3.200000e+01 : f32
      %61 = vector.broadcast %cst_31 : f32 to vector<8x1xf32>
      %62 = arith.divf %60, %61 : vector<8x1xf32>
      %63 = vector.broadcast %55 : vector<8x1xf32> to vector<8x32xf32>
      %64 = arith.subf %49, %63 : vector<8x32xf32>
      %cst_32 = arith.constant 9.99999997E-7 : f32
      %65 = vector.broadcast %cst_32 : f32 to vector<8x1xf32>
      %66 = arith.addf %62, %65 : vector<8x1xf32>
      %67 = math.rsqrt %66 : vector<8x1xf32>
      %68 = vector.broadcast %67 : vector<8x1xf32> to vector<8x32xf32>
      %69 = arith.mulf %64, %68 : vector<8x32xf32>
      %70 = vector.broadcast %50 : vector<1x32xf32> to vector<8x32xf32>
      %71 = arith.mulf %69, %70 : vector<8x32xf32>
      %72 = vector.broadcast %51 : vector<1x32xf32> to vector<8x32xf32>
      %73 = arith.addf %71, %72 : vector<8x32xf32>
      %74 = arith.truncf %73 : vector<8x32xf32> to vector<8x32xbf16>
      %cst_33 = arith.constant 0.000000e+00 : f32
      %75 = vector.broadcast %cst_33 : f32 to vector<8x32xf32>
      %c0_34 = arith.constant 0 : index
      %c0_35 = arith.constant 0 : index
      %76 = vector.load %arg7[%c0_34, %c0_35] : memref<32x64xbf16, #tpu.memory_space<vmem>>, vector<32x64xbf16>
      %cst_36 = arith.constant dense<0.000000e+00> : vector<8x64xf32>
      %77 = tpu.matmul %74, %76, %cst_36 {dimension_numbers = #tpu.dot_dimension_numbers<[1], [0], [0], [1], [0, 0, 1, 1], [], []>} : vector<8x32xbf16>, vector<32x64xbf16>, vector<8x64xf32> -> vector<8x64xf32>
      %c0_37 = arith.constant 0 : index
      %c0_38 = arith.constant 0 : index
      %78 = vector.load %arg8[%c0_37, %c0_38] : memref<1x64xf32, #tpu.memory_space<vmem>>, vector<1x64xf32>
      %79 = vector.broadcast %78 : vector<1x64xf32> to vector<8x64xf32>
      %80 = arith.addf %77, %79 : vector<8x64xf32>
      %cst_39 = arith.constant 0.000000e+00 : f32
      %81 = vector.broadcast %cst_39 : f32 to vector<8x64xf32>
      %82 = arith.maximumf %80, %81 : vector<8x64xf32>
      %83 = arith.truncf %82 : vector<8x64xf32> to vector<8x64xbf16>
      %c0_40 = arith.constant 0 : index
      %c0_41 = arith.constant 0 : index
      %84 = vector.load %arg9[%c0_40, %c0_41] : memref<64x32xbf16, #tpu.memory_space<vmem>>, vector<64x32xbf16>
      %cst_42 = arith.constant dense<0.000000e+00> : vector<8x32xf32>
      %85 = tpu.matmul %83, %84, %cst_42 {dimension_numbers = #tpu.dot_dimension_numbers<[1], [0], [0], [1], [0, 0, 1, 1], [], []>} : vector<8x64xbf16>, vector<64x32xbf16>, vector<8x32xf32> -> vector<8x32xf32>
      %86 = arith.addf %75, %85 : vector<8x32xf32>
      %c0_43 = arith.constant 0 : index
      %c0_44 = arith.constant 0 : index
      %87 = vector.load %arg10[%c0_43, %c0_44] : memref<1x32xf32, #tpu.memory_space<vmem>>, vector<1x32xf32>
      %88 = vector.broadcast %87 : vector<1x32xf32> to vector<8x32xf32>
      %89 = arith.addf %86, %88 : vector<8x32xf32>
      %90 = arith.addf %89, %73 : vector<8x32xf32>
      %c0_45 = arith.constant 0 : index
      %c0_46 = arith.constant 0 : index
      %91 = vector.load %arg11[%c0_45, %c0_46] : memref<1x32xf32, #tpu.memory_space<vmem>>, vector<1x32xf32>
      %c0_47 = arith.constant 0 : index
      %c0_48 = arith.constant 0 : index
      %92 = vector.load %arg12[%c0_47, %c0_48] : memref<1x32xf32, #tpu.memory_space<vmem>>, vector<1x32xf32>
      %cst_49 = arith.constant dense<0.000000e+00> : vector<8xf32>
      %93 = vector.multi_reduction <add>, %90, %cst_49 [1] : vector<8x32xf32> to vector<8xf32>
      %94 = vector.shape_cast %93 : vector<8xf32> to vector<8x1xf32>
      %cst_50 = arith.constant 3.200000e+01 : f32
      %95 = vector.broadcast %cst_50 : f32 to vector<8x1xf32>
      %96 = arith.divf %94, %95 : vector<8x1xf32>
      %97 = vector.broadcast %96 : vector<8x1xf32> to vector<8x32xf32>
      %98 = arith.subf %90, %97 : vector<8x32xf32>
      %99 = arith.mulf %98, %98 : vector<8x32xf32>
      %cst_51 = arith.constant dense<0.000000e+00> : vector<8xf32>
      %100 = vector.multi_reduction <add>, %99, %cst_51 [1] : vector<8x32xf32> to vector<8xf32>
      %101 = vector.shape_cast %100 : vector<8xf32> to vector<8x1xf32>
      %cst_52 = arith.constant 3.200000e+01 : f32
      %102 = vector.broadcast %cst_52 : f32 to vector<8x1xf32>
      %103 = arith.divf %101, %102 : vector<8x1xf32>
      %104 = vector.broadcast %96 : vector<8x1xf32> to vector<8x32xf32>
      %105 = arith.subf %90, %104 : vector<8x32xf32>
      %cst_53 = arith.constant 9.99999997E-7 : f32
      %106 = vector.broadcast %cst_53 : f32 to vector<8x1xf32>
      %107 = arith.addf %103, %106 : vector<8x1xf32>
      %108 = math.rsqrt %107 : vector<8x1xf32>
      %109 = vector.broadcast %108 : vector<8x1xf32> to vector<8x32xf32>
      %110 = arith.mulf %105, %109 : vector<8x32xf32>
      %111 = vector.broadcast %91 : vector<1x32xf32> to vector<8x32xf32>
      %112 = arith.mulf %110, %111 : vector<8x32xf32>
      %113 = vector.broadcast %92 : vector<1x32xf32> to vector<8x32xf32>
      %114 = arith.addf %112, %113 : vector<8x32xf32>
      %c0_54 = arith.constant 0 : index
      %c0_55 = arith.constant 0 : index
      %c0_56 = arith.constant 0 : index
      %115 = vector.load %arg13[%c0_54, %c0_55, %c0_56] : memref<1x8x32xf32, #tpu.memory_space<vmem>>, vector<1x8x32xf32>
      %116 = vector.shape_cast %115 : vector<1x8x32xf32> to vector<8x32xf32>
      %117 = vector.shape_cast %114 : vector<8x32xf32> to vector<1x8x32xf32>
      tpu.vector_store %arg13[%c0_54, %c0_55, %c0_56], %117 {strides = array<i32>} : memref<1x8x32xf32, #tpu.memory_space<vmem>>, vector<1x8x32xf32>,
    } else {
    }
    return
  }
  func.func @transform_0(%arg0: i32, %arg1: i32) -> (i32, i32, i32) {
    %c0_i32 = arith.constant 0 : i32
    %c0_i32_0 = arith.constant 0 : i32
    %c0_i32_1 = arith.constant 0 : i32
    return %arg0, %c0_i32, %c0_i32_0 : i32, i32, i32
  }
  func.func @transform_1(%arg0: i32, %arg1: i32) -> (i32, i32) {
    %c0_i32 = arith.constant 0 : i32
    %c0_i32_0 = arith.constant 0 : i32
    return %c0_i32, %arg1 : i32, i32
  }
  func.func @transform_2(%arg0: i32, %arg1: i32) -> (i32, i32) {
    %c0_i32 = arith.constant 0 : i32
    %c0_i32_0 = arith.constant 0 : i32
    return %arg1, %c0_i32 : i32, i32
  }
  func.func @transform_3(%arg0: i32, %arg1: i32) -> (i32, i32) {
    %c0_i32 = arith.constant 0 : i32
    %c0_i32_0 = arith.constant 0 : i32
    %c0_i32_1 = arith.constant 0 : i32
    return %c0_i32, %c0_i32_0 : i32, i32
  }
  func.func @transform_4(%arg0: i32, %arg1: i32) -> (i32, i32) {
    %c0_i32 = arith.constant 0 : i32
    %c0_i32_0 = arith.constant 0 : i32
    %c0_i32_1 = arith.constant 0 : i32
    return %c0_i32, %c0_i32_0 : i32, i32
  }
  func.func @transform_5(%arg0: i32, %arg1: i32) -> (i32, i32) {
    %c0_i32 = arith.constant 0 : i32
    %c0_i32_0 = arith.constant 0 : i32
    %c0_i32_1 = arith.constant 0 : i32
    return %c0_i32, %c0_i32_0 : i32, i32
  }
  func.func @transform_6(%arg0: i32, %arg1: i32) -> (i32, i32) {
    %c0_i32 = arith.constant 0 : i32
    %c0_i32_0 = arith.constant 0 : i32
    %c0_i32_1 = arith.constant 0 : i32
    return %c0_i32, %c0_i32_0 : i32, i32
  }
  func.func @transform_7(%arg0: i32, %arg1: i32) -> (i32, i32) {
    %c0_i32 = arith.constant 0 : i32
    %c0_i32_0 = arith.constant 0 : i32
    %c0_i32_1 = arith.constant 0 : i32
    return %c0_i32, %c0_i32_0 : i32, i32
  }
  func.func @transform_8(%arg0: i32, %arg1: i32) -> (i32, i32) {
    %c0_i32 = arith.constant 0 : i32
    %c0_i32_0 = arith.constant 0 : i32
    %c0_i32_1 = arith.constant 0 : i32
    return %c0_i32, %c0_i32_0 : i32, i32
  }
  func.func @transform_9(%arg0: i32, %arg1: i32) -> (i32, i32) {
    %c0_i32 = arith.constant 0 : i32
    %c0_i32_0 = arith.constant 0 : i32
    %c0_i32_1 = arith.constant 0 : i32
    return %c0_i32, %c0_i32_0 : i32, i32
  }
  func.func @transform_10(%arg0: i32, %arg1: i32) -> (i32, i32) {
    %c0_i32 = arith.constant 0 : i32
    %c0_i32_0 = arith.constant 0 : i32
    %c0_i32_1 = arith.constant 0 : i32
    return %c0_i32, %c0_i32_0 : i32, i32
  }
  func.func @transform_11(%arg0: i32, %arg1: i32) -> (i32, i32, i32) {
    %c0_i32 = arith.constant 0 : i32
    %c0_i32_0 = arith.constant 0 : i32
    %c0_i32_1 = arith.constant 0 : i32
    return %arg0, %c0_i32, %c0_i32_0 : i32, i32, i32
  }
  func.func @transform_12(%arg0: i32, %arg1: i32) -> (i32, i32, i32, i32) {
    %c0_i32 = arith.constant 0 : i32
    %c0_i32_0 = arith.constant 0 : i32
    %c0_i32_1 = arith.constant 0 : i32
    return %arg0, %arg1, %c0_i32, %c0_i32_0 : i32, i32, i32, i32
  }
}

</mosaic_0001>

<bundles_post_ra>
// kernel: tpu_custom_call.1
= control target key start
LH: loop header
LB: loop body
LE: loop exit
PB: predicated region body
PF: predicated region fallthrough
CT: control target
= control target key end

     0   :  { %s3098_s0 = inlined_call_operand.vmem [shape: f32[2,8,32], index: 0, kind: input, shape index: {}]   ;;  %s3099_s1 = inlined_call_operand.vmem [shape: bf16[32,96], index: 1, kind: input, shape index: {}]   ;;  %s3100_s2 = inlined_call_operand.vmem [shape: bf16[32,32], index: 2, kind: input, shape index: {}]   ;;  %s3101_s3 = inlined_call_operand.vmem [shape: f32[1,32], index: 3, kind: input, shape index: {}]   ;;  %s3102_s4 = inlined_call_operand.vmem [shape: f32[1,32], index: 4, kind: input, shape index: {}]   ;;  %s3103_s5 = inlined_call_operand.hbm [shape: bf16[32,64], index: 5, kind: input, shape index: {}]   ;;  %s3104_s6 = inlined_call_operand.vmem [shape: f32[1,64], index: 6, kind: input, shape index: {}]   ;;  %s3105_s7 = inlined_call_operand.vmem [shape: bf16[64,32], index: 7, kind: input, shape index: {}]   ;;  %s3106_s8 = inlined_call_operand.vmem [shape: f32[1,32], index: 8, kind: input, shape index: {}]   ;;  %s3107_s9 = inlined_call_operand.vmem [shape: f32[1,32], index: 9, kind: input, shape index: {}]   ;;  %s3108_s10 = inlined_call_operand.vmem [shape: f32[1,32], index: 10, kind: input, shape index: {}]   ;;  %s3109_s11 = inlined_call_operand.hbm [shape: f32[2,8,32], index: 11, kind: output, shape index: {0}]   ;;  %s3110_s12 = inlined_call_operand.hbm [shape: bf16[2,4,8,8], index: 12, kind: output, shape index: {1}]  }
   0x1   :  { %3118 = sst [smem:[#allocation16_spill]] %s3098_s0 }
   0x2   :  { %18 = vsyncpa [#allocation4], 0 }
   0x3   :  { %19 = vsyncpa [#allocation5], 0 }
   0x4   :  { %21 = vsyncpa [#allocation5 + $0x1], 0 }
   0x5   :  { %22 = vsyncpa [#allocation8], 0 }
   0x6   :  { %24 = vsyncpa [#allocation8 + $0x1], 0  ;;  %s2634_s21 = smov 0   ;;  %s2636_s22 = smov 0  }
   0x7   :  { %s2638_s23 = smov 0   ;;  %s2640_s24 = smov 0  }
   0x8   :  { %s2642_s25 = smov 0   ;;  %s2644_s26 = smov 0  }
   0x9 LB: > { %3119 = sst [smem:[#allocation12_spill]] %s2536_s23  ;;  %s2127_s27 = sadd.s32 4294967295, %s2548_s26   ;;  %s2548_s26 = sphi %s2644_s26, %s30_s26   ;;  %s2544_s25 = sphi %s2642_s25, %s3137_s25   ;;  %s2540_s24 = sphi %s2640_s24, %s3136_s24   ;;  %s2536_s23 = sphi %s2638_s23, %s3135_s23   ;;  %s2532_s22 = sphi %s2636_s22, %s3139_s22   ;;  %s2528_s21 = sphi %s2634_s21, %s3138_s21  }
   0xa   : > { %3120 = sst [smem:[#allocation13_spill]] %s2544_s25  ;;  %s2128_s28 = sadd.s32 4294967294, %s2548_s26  }
   0xb   : > { %s42_s29 = sadd.s32 1, %s2544_s25  ;;  %s295_s30 = sadd.s32 1, %s2536_s23 }
   0xc   : > { %p44_p0 = scmp.ge.s32.totalorder %s42_s29, 2  ;;  %p305_p1 = scmp.ne.s32.totalorder %s2536_s23, %s2532_s22 }
   0xd   : > { %p306_p2 = scmp.eq.s32.totalorder %s2127_s27, 1  ;;  %p311_p3 = scmp.ne.s32.totalorder %s2532_s22, %s2528_s21 }
   0xe   : > { %s3141_s29 = smov (%p44_p0, %s42_s29), 0  ;;  %p312_p5 = scmp.eq.s32.totalorder %s2128_s28, 1 }
   0xf   : > { %3121 = sst [smem:[#allocation14_spill]] %s3141_s29  ;;  %p2674_p4 = por %p306_p2, %p305_p1 }
  0x10   : > { %s292_s14 = ssub.s32 %s2544_s25, %s3141_s29  ;;  %p2129_p6 = scmp.ge.s32.totalorder %s2548_s26, 1 }
  0x11   : > { %s3122_s13 = scalar_select %p2674_p4, 1, 0 }
  0x12   : > { %p293_p7 = scmp.eq.s32.totalorder %s292_s14, 0  ;;  %p2681_p8 = por %p312_p5, %p311_p3 }
  0x13   : > { %p347_p9 = scmp.lt.s32.totalorder %s2548_s26, 3  ;;  %p2693_p11 = scmp.eq.s32.totalorder %s2127_s27, 0 }
  0x14   : > { %s3123_s15 = scalar_select %p2681_p8, 1, 0 }
  0x15   : > { %s2687_s16 = scalar_select %p293_p7, %s2536_s23, %s295_s30  }
  0x16   : > { %p2689_p10 = pnand %p2129_p6, %p347_p9  ;;  %s2550_s19 = smov [#allocation3]  }
  0x17   : > { %3124 = sst [smem:[#allocation15_spill]] %s2687_s16  ;;  %s381_s20 = sshll.u32 %s2550_s19, 4  ;;  %s382_s20 = int_to_ptr.vmem [resolvable:$true] %s381_s20 }
  0x18   : > { %s3125_s17 = scalar_select %p2689_p10, 1, 0 }
  0x19   : > { %s3126_s18 = scalar_select %p2693_p11, 1, 0 }
  0x1a   : > { %p2297_p12 = pneg %p2689_p10  ;;  %s2406_s29 = scalar_lea.hbm %s3103_s5, 256 }
  0x1b   : > { %p2407_p0 = scmp.ne.s32.totalorder %s3103_s5, %s2406_s29  ;;  %p2413_p5 = scmp.lt.u32.totalorder %s2406_s29, %s3103_s5 }
  0x1c   : > { %p2701_p13 = pnand %p2693_p11, %p2297_p12 }
  0x1e   : > { %p2408_p1 = pneg %p2701_p13 }
  0x20   : > { %p2409_p2 = pnand %p2408_p1, %p2407_p0 }
  0x22   : > { %p2410_p3 = pneg %p2409_p2 }
  0x24   : > { %p2415_p6 = pnand %p2413_p5, %p2410_p3 }
  0x26   : > { %2418 = shalt.err (!%p2415_p6)
}
  0x27   : > { %s2419_s23 = scalar_lea.vmem %s382_s20, 256  ;;  %p2427_p8 = scmp.lt.s32.totalorder %s382_s20, %s382_s20 }
  0x28   : > { %p2420_p7 = scmp.ne.s32.totalorder %s382_s20, %s2419_s23  ;;  %p2428_p4 = scmp.lt.s32.totalorder %s2419_s23, %s2419_s23 }
  0x2a   : > { %p2422_p9 = pnand %p2420_p7, %p2408_p1  ;;  %p2429_p11 = por %p2428_p4, %p2427_p8 }
  0x2c   : > { %p2423_p12 = pneg %p2422_p9 }
  0x2e   : > { %p2430_p10 = pnand %p2429_p11, %p2423_p12 }
  0x30   : > { %2433 = shalt.err (!%p2430_p10)
}
  0x31   : > { %s2551_s25 = smov 64   ;;  %s2552_s30 = smov 4  }
  0x32   : > { %2300 = dma.hbm_to_vmem [thread:$0]  (!%p2701_p13), %s3103_s5, 256, %s382_s20, [#allocation4], %s2551_s25, %s2551_s25, %s2552_s30  }
  0x33   : > { %p3128_p0 = scmp.ne.s32.totalorder %s3125_s17, 0 }
  0x34   : > { %p3129_p2 = scmp.ne.s32.totalorder (!%p3128_p0), %s3126_s18, 0 }
  0x35   : > { %419 = sbr.rel (%p3128_p0) target bundleno = 2793 (0xae9), region = 64 }
  0x3c   : > { %2515 = dma.done.wait (%p3129_p2), [#allocation4], 256  }
  0x3d   : > { %2517 = vsyncadd (%p3129_p2), [#allocation4], 4294967040  ;;  %p474_p4 = scmp.lt.s32.totalorder %s2540_s24, 1  ;;  %vm494_vm0 = vcmask 261120   ;;  %v2553_v0 = vmov 0.0   ;;  %vm2554_vm1 = vmmov 0   ;;  %v569_v15 = vlaneseq }
  0x3e   : > { %2205 = vmatprep.subr.bf16.mxu0 %v2553_v0  ;;  %2209 = vmatprep.mubr.msk.bf16.mxu0 %vm2554_vm1, %v2553_v0  ;;  %495 = vst.msk [vmem:[#allocation2] sm:$0xff] %vm494_vm0, %v2553_v0  ;;  %s3130_s0 = sld [smem:[#allocation16_spill]]  ;;  %v2376_v1 = vld [vmem:[%s3099_s1] sm:$0xff]   ;;  %v2377_v2 = vld [vmem:[%s3099_s1 + $0x8] sm:$0xff]   ;;  %s2555_s30 = smov 104   ;;  %v2561_v37 = vmov 0  }
  0x3f   : > { %s475_s23 = scalar_select %p474_p4, %s2540_s24, 1  ;;  %2213 = vmatprep.subr.bf16.mxu1 %v2553_v0  ;;  %2215 = vmatprep.mubr.msk.bf16.mxu1 %vm2554_vm1, %v2553_v0  ;;  %v2559_v13 = vmov 1983009808   ;;  %v570_v17 = vshrl.u32 %v569_v15, 7  ;;  %v2560_v18 = vmov 1934713408  }
  0x40   : > { %2206 = vmatpush3.bf16.msra.mxu0 %v2376_v1  ;;  %s2556_s14 = smov 120   ;;  %s2557_s27 = smov 96   ;;  %v567_v14 = vunpack.c.l.s4 %v2559_v13  ;;  %v584_v19 = vunpack.c.l.s4 %v2560_v18  ;;  %vm1067_vm2 = vcmask 64512   ;;  %vm1300_vm3 = vcmask 60416  }
  0x41   : > { %s2138_s29 = sshll.u32 %s475_s23, 3  ;;  %2207 = vmatprep.subr.bf16.mxu0 %v2553_v0  ;;  %s2558_s23 = smov 112   ;;  %vm1308_vm4 = vcmask 1043456   ;;  %vm1661_vm5 = vcmask 130048   ;;  %vm1664_vm6 = vcmask 195584   ;;  %vm1871_vm7 = vcmask 523264  }
  0x42   : > { %v568_v16 = vunpack.c.0.s8 %v567_v14  ;;  %v585_v22 = vunpack.c.0.s8 %v584_v19  ;;  %s2885_s16 = sand.u32 1, %s2532_s22   ;;  %p3131_p10 = scmp.ne.s32.totalorder %s3122_s13, 0 }
  0x43   : > { %s2137_s17 = sshll.u32 %s2885_s16, 4  ;;  %s2566_s25 = smov [#allocation7]  }
  0x44   : > { %s477_s18 = scalar_lea.vmem %s3130_s0, %s2138_s29  ;;  %2208 = vmatpush3.bf16.msra.mxu0 %v2377_v2  ;;  %v2770_v20 = vsub.s32 %v568_v16, %v570_v17  ;;  %v2780_v26 = vsub.s32 %v585_v22, %v570_v17  ;;  %s2562_s29 = smov 64  }
  0x45   : > { %v2746_v3 = vld [vmem:[%s477_s18] sm:$0xff]  ;;  %2219 = vmatprep.subr.bf16.mxu0 %v2553_v0  ;;  %s2896_s18 = scalar_lea.vmem [#allocation7], %s2137_s17 }
  0x46   : > { %v497_v4 = vpack.c.bf16 %v2746_v3, %v2746_v3 }
  0x48   : > { %2210 = vmatmul.mubr.msk.bf16.vlgmr.msra.gmra.mrb[0].mxu0 %vm494_vm0, %v497_v4 }
  0x49   : > { %2221 = vmatprep.mubr.msk.bf16.mxu0 %vm2554_vm1, %v2553_v0 }
 0x11b   : > { %v552_v5 = vpop.f32.mrb[0].mxu0 }
 0x11c   : > { %v2755_v6 = vpack.c.bf16 %v552_v5, %v552_v5  ;;  %v2211_v7 = vpop.f32.mrb[1].mxu0 }
 0x11d   : > { %v555_v8 = vpop.f32.mrb[2].mxu0 }
 0x11e   : > { %564 = vrot.lane.b32.xlu1 %v2755_v6, %s2555_s30  ;;  %560 = vrot.lane.b32.xlu0 %v2755_v6, %s2556_s14  ;;  %v2212_v9 = vpop.f32.mrb[3].mxu0  ;;  %v572_v25 = vrot.slane %v2755_v6, %v2770_v20  ;;  %s2563_s30 = smov 8   ;;  %s2564_s14 = smov 16  }
 0x122   : > { %727 = vrot.lane.b32.xlu1 %v2755_v6, %s2557_s27  ;;  %562 = vrot.lane.b32.xlu0 %v2755_v6, %s2558_s23 }
 0x190   : > { %v2761_v10 = vpop.permute.xlu0 %560  ;;  %v2764_v11 = vpop.permute.xlu1 %564 }
 0x191   : > { %729 = vrot.lane.b32.xlu0 %v2761_v10, %s2557_s27  ;;  %v614_v21 = vrot.slane %v2764_v11, %v2770_v20  ;;  %v606_v23 = vrot.slane %v2761_v10, %v2770_v20 }
 0x193   : > { %v615_v27 = vcombine.low %v606_v23, %v614_v21  ;;  %v616_v30 = vcombine.high %v606_v23, %v614_v21 }
 0x194   : > { %v2766_v12 = vpop.permute.xlu0 %562  ;;  %v728_v36 = vpop.permute.xlu1 %727 }
 0x195   : > { %733 = vrot.lane.b32.xlu0 %v2764_v11, %s2557_s27  ;;  %731 = vrot.lane.b32.xlu1 %v2766_v12, %s2557_s27  ;;  %v580_v24 = vrot.slane %v2766_v12, %v2770_v20  ;;  %v2783_v31 = vrot.slane %v615_v27, %v2780_v26  ;;  %v2792_v34 = vrot.slane %v616_v30, %v2780_v26  ;;  %s2565_s27 = smov 24  }
 0x196   : > { %v742_v43 = vrot.slane %v728_v36, %v2770_v20 }
 0x197   : > { %v581_v28 = vcombine.low %v572_v25, %v580_v24  ;;  %v582_v29 = vcombine.high %v572_v25, %v580_v24  ;;  %v631_v38 = vcombine.high %v2783_v31, %v2561_v37  ;;  %v632_v41 = vcombine.high %v2792_v34, %v2561_v37 }
 0x198   : > { %v638_v42 = vshrl.u32 %v2783_v31, 16  ;;  %v654_v46 = vshrl.u32 %v2792_v34, 16 }
 0x199   : > { %v2786_v32 = vrot.slane %v581_v28, %v2780_v26  ;;  %v2789_v33 = vrot.slane %v582_v29, %v2780_v26  ;;  %v646_v51 = vshrl.u32 %v631_v38, 16  ;;  %v662_v55 = vshrl.u32 %v632_v41, 16 }
 0x19b   : > { %v597_v39 = vcombine.high %v2786_v32, %v2561_v37  ;;  %v598_v40 = vcombine.high %v2789_v33, %v2561_v37  ;;  %v637_v44 = vshrl.u32 %v2786_v32, 16  ;;  %v653_v47 = vshrl.u32 %v2789_v33, 16 }
 0x19c   : > { %v635_v56 = vpack.i.b16 %v2783_v31, %v2786_v32  ;;  %v651_v31 = vpack.i.b16 %v2792_v34, %v2789_v33 }
 0x19d   : > { %v645_v52 = vshrl.u32 %v597_v39, 16  ;;  %v661_v53 = vshrl.u32 %v598_v40, 16  ;;  %v639_v59 = vpack.i.b16 %v638_v42, %v637_v44  ;;  %v643_v60 = vpack.i.b16 %v631_v38, %v597_v39 }
 0x19e   : > { %v655_v63 = vpack.i.b16 %v654_v46, %v653_v47  ;;  %v659_v1 = vpack.i.b16 %v632_v41, %v598_v40  ;;  %v665_v46 = vcombine.low %v635_v56, %v651_v31 }
 0x19f   : > { %v647_v5 = vpack.i.b16 %v646_v51, %v645_v52  ;;  %v663_v7 = vpack.i.b16 %v662_v55, %v661_v53 }
 0x1a0   : > { %v673_v41 = vcombine.low %v643_v60, %v659_v1  ;;  %v690_v44 = vcombine.low %v639_v59, %v655_v63  ;;  %v672_v55 = vrot.slane %v665_v46, %v2770_v20 }
 0x1a1   : > { %v698_v40 = vcombine.low %v647_v5, %v663_v7 }
 0x1a2   : > { %v680_v51 = vrot.slane %v673_v41, %v2770_v20  ;;  %v697_v53 = vrot.slane %v690_v44, %v2770_v20 }
 0x1a3   : > { %v705_v34 = vrot.slane %v698_v40, %v2770_v20 }
 0x203   : > { %v730_v35 = vpop.permute.xlu0 %729 }
 0x204   : > { %v776_v48 = vrot.slane %v730_v35, %v2770_v20 }
 0x207   : > { %v734_v45 = vpop.permute.xlu0 %733  ;;  %v732_v49 = vpop.permute.xlu1 %731 }
 0x208   : > { %v784_v50 = vrot.slane %v734_v45, %v2770_v20  ;;  %v750_v54 = vrot.slane %v732_v49, %v2770_v20 }
 0x20a   : > { %v785_v57 = vcombine.low %v776_v48, %v784_v50  ;;  %v786_v58 = vcombine.high %v776_v48, %v784_v50  ;;  %v751_v61 = vcombine.low %v742_v43, %v750_v54  ;;  %v752_v62 = vcombine.high %v742_v43, %v750_v54 }
 0x20c   : > { %v793_v2 = vrot.slane %v785_v57, %v2780_v26  ;;  %v800_v4 = vrot.slane %v786_v58, %v2780_v26  ;;  %v759_v8 = vrot.slane %v751_v61, %v2780_v26  ;;  %v766_v9 = vrot.slane %v752_v62, %v2780_v26 }
 0x20d   : > { %v706_v57 = vcombine.low %v697_v53, %v705_v34  ;;  %v681_v58 = vcombine.low %v672_v55, %v680_v51 }
 0x20e   : > { %v801_v13 = vcombine.high %v793_v2, %v2561_v37  ;;  %v802_v14 = vcombine.high %v800_v4, %v2561_v37  ;;  %v808_v15 = vshrl.u32 %v793_v2, 16  ;;  %v824_v16 = vshrl.u32 %v800_v4, 16 }
 0x20f   : > { %v767_v17 = vcombine.high %v759_v8, %v2561_v37  ;;  %v768_v18 = vcombine.high %v766_v9, %v2561_v37  ;;  %v807_v19 = vshrl.u32 %v759_v8, 16  ;;  %v823_v21 = vshrl.u32 %v766_v9, 16 }
 0x210   : > { %v805_v22 = vpack.i.b16 %v793_v2, %v759_v8  ;;  %v816_v23 = vshrl.u32 %v801_v13, 16  ;;  %v821_v24 = vpack.i.b16 %v800_v4, %v766_v9  ;;  %v832_v25 = vshrl.u32 %v802_v14, 16 }
 0x211   : > { %v815_v27 = vshrl.u32 %v767_v17, 16  ;;  %v831_v28 = vshrl.u32 %v768_v18, 16  ;;  %v809_v29 = vpack.i.b16 %v808_v15, %v807_v19  ;;  %v813_v30 = vpack.i.b16 %v801_v13, %v767_v17 }
 0x212   : > { %v825_v32 = vpack.i.b16 %v824_v16, %v823_v21  ;;  %v829_v35 = vpack.i.b16 %v802_v14, %v768_v18  ;;  %v835_v36 = vcombine.low %v805_v22, %v821_v24  ;;  %v713_v2 = vrot.slane %v706_v57, %v2780_v26 }
 0x213   : > { %v817_v38 = vpack.i.b16 %v816_v23, %v815_v27  ;;  %v833_v39 = vpack.i.b16 %v832_v25, %v831_v28  ;;  %v688_v7 = vrot.slane %v681_v58, %v2780_v26 }
 0x214   : > { %v843_v42 = vcombine.low %v813_v30, %v829_v35  ;;  %v860_v43 = vcombine.low %v809_v29, %v825_v32  ;;  %v842_v47 = vrot.slane %v835_v36, %v2770_v20  ;;  %v719_v13 = vshrl.u32 %v713_v2, 16 }
 0x215   : > { %v868_v45 = vcombine.low %v817_v38, %v833_v39  ;;  %v717_v15 = vpack.i.b16 %v713_v2, %v688_v7  ;;  %v718_v16 = vshrl.u32 %v688_v7, 16  ;;  %v714_v21 = vcombine.high %v713_v2, %v2561_v37 }
 0x216   : > { %v850_v48 = vrot.slane %v843_v42, %v2770_v20  ;;  %v867_v49 = vrot.slane %v860_v43, %v2770_v20  ;;  %v689_v23 = vcombine.high %v688_v7, %v2561_v37 }
 0x217   : > { %v875_v33 = vrot.slane %v868_v45, %v2770_v20  ;;  %v720_v19 = vpack.i.b16 %v719_v13, %v718_v16  ;;  %v725_v24 = vshrl.u32 %v714_v21, 16 }
 0x218   : > { %v851_v50 = vcombine.low %v842_v47, %v850_v48  ;;  %v723_v25 = vpack.i.b16 %v714_v21, %v689_v23  ;;  %v724_v27 = vshrl.u32 %v689_v23, 16 }
 0x219   : > { %v876_v52 = vcombine.low %v867_v49, %v875_v33 }
 0x21a   : > { %v858_v54 = vrot.slane %v851_v50, %v2780_v26  ;;  %v726_v28 = vpack.i.b16 %v725_v24, %v724_v27 }
 0x21b   : > { %v883_v56 = vrot.slane %v876_v52, %v2780_v26 }
 0x21c   : > { %v888_v60 = vshrl.u32 %v858_v54, 16  ;;  %v859_v4 = vcombine.high %v858_v54, %v2561_v37 }
 0x21d   : > { %v887_v59 = vpack.i.b16 %v883_v56, %v858_v54  ;;  %v889_v61 = vshrl.u32 %v883_v56, 16  ;;  %v884_v62 = vcombine.high %v883_v56, %v2561_v37 }
 0x21e   : > { %v894_v14 = vshrl.u32 %v859_v4, 16 }
 0x21f   : > { %v1072_v63 = vsel %vm1067_vm2, %v887_v59, 0  ;;  %v890_v1 = vpack.i.b16 %v889_v61, %v888_v60  ;;  %v895_v8 = vshrl.u32 %v884_v62, 16  ;;  %v893_v9 = vpack.i.b16 %v884_v62, %v859_v4 }
 0x220   : > { %2214 = vmatpush3.bf16.xpose.msra.mxu1 %v1072_v63 }
 0x221   : > { %v1118_v5 = vsel %vm1067_vm2, %v890_v1, 0  ;;  %2225 = vmatprep.subr.bf16.mxu1 %v2553_v0  ;;  %v896_v17 = vpack.i.b16 %v895_v8, %v894_v14  ;;  %v1164_v18 = vsel %vm1067_vm2, %v893_v9, 0 }
 0x222   : > { %2220 = vmatpush3.bf16.xpose.msra.mxu0 %v1118_v5 }
 0x223   : > { %2231 = vmatprep.subr.bf16.mxu0 %v2553_v0  ;;  %v1210_v22 = vsel %vm1067_vm2, %v896_v17, 0 }
 0x227   : > { %2216 = vmatmul.mubr.msk.bf16.vlgmr.msra.gmra.mrb[0].mxu1 %vm1067_vm2, %v717_v15 }
 0x228   : > { %2226 = vmatpush3.bf16.xpose.msra.mxu1 %v1164_v18  ;;  %2227 = vmatprep.mubr.msk.bf16.mxu1 %vm2554_vm1, %v2553_v0 }
 0x229   : > { %2222 = vmatmul.mubr.msk.bf16.vlgmr.msra.gmra.mrb[4].mxu0 %vm1067_vm2, %v720_v19  ;;  %2237 = vmatprep.subr.bf16.mxu1 %v2553_v0 }
 0x22a   : > { %2232 = vmatpush3.bf16.xpose.msra.mxu0 %v1210_v22  ;;  %2233 = vmatprep.mubr.msk.bf16.mxu0 %vm2554_vm1, %v2553_v0 }
 0x22b   : > { %2243 = vmatprep.subr.bf16.mxu0 %v2553_v0 }
 0x22f   : > { %2228 = vmatmul.mubr.msk.bf16.vlgmr.msra.gmra.mrb[4].mxu1 %vm1067_vm2, %v723_v25 }
 0x230   : > { %2239 = vmatprep.mubr.msk.bf16.mxu1 %vm2554_vm1, %v2553_v0 }
 0x231   : > { %2234 = vmatmul.mubr.msk.bf16.vlgmr.msra.gmra.mrb[8].mxu0 %vm1067_vm2, %v726_v28 }
 0x232   : > { %2245 = vmatprep.mubr.msk.bf16.mxu0 %vm2554_vm1, %v2553_v0 }
 0x2fa   : > { %v1108_v29 = vpop.f32.mrb[0].mxu1 }
 0x2fb   : > { %v2217_v30 = vpop.f32.mrb[1].mxu1  ;;  %v1252_v31 = vsel %vm1067_vm2, %v1108_v29, -inf }
 0x2fc   : > { %1253 = vmax.xlane.f32.xlu1 %v1252_v31  ;;  %v1111_v32 = vpop.f32.mrb[2].mxu1  ;;  %v1154_v35 = vpop.f32.mrb[4].mxu0 }
 0x2fd   : > { %v2218_v36 = vpop.f32.mrb[3].mxu1  ;;  %v2223_v38 = vpop.f32.mrb[5].mxu0  ;;  %v1255_v39 = vsel %vm1067_vm2, %v1154_v35, -inf }
 0x2fe   : > { %1256 = vmax.xlane.f32.xlu0 %v1255_v39  ;;  %v1157_v40 = vpop.f32.mrb[6].mxu0 }
 0x2ff   : > { %v2224_v41 = vpop.f32.mrb[7].mxu0 }
 0x302   : > { %v1200_v42 = vpop.f32.mrb[4].mxu1 }
 0x303   : > { %v2229_v43 = vpop.f32.mrb[5].mxu1  ;;  %v1258_v44 = vsel %vm1067_vm2, %v1200_v42, -inf }
 0x304   : > { %v1203_v45 = vpop.f32.mrb[6].mxu1  ;;  %1259 = vmax.xlane.f32.xlu0 %v1258_v44  ;;  %v1246_v46 = vpop.f32.mrb[8].mxu0 }
 0x305   : > { %v2230_v47 = vpop.f32.mrb[7].mxu1  ;;  %v2235_v48 = vpop.f32.mrb[9].mxu0  ;;  %v1261_v49 = vsel %vm1067_vm2, %v1246_v46, -inf }
 0x306   : > { %1262 = vmax.xlane.f32.xlu1 %v1261_v49  ;;  %v1249_v33 = vpop.f32.mrb[10].mxu0 }
 0x307   : > { %v2236_v34 = vpop.f32.mrb[11].mxu0 }
 0x317   : > { %899 = vrot.lane.b32.xlu1 %v2761_v10, %s2562_s29 }
 0x31a   : > { %897 = vrot.lane.b32.xlu0 %v2755_v6, %s2562_s29 }
 0x389   : > { %v1254_v50 = vpop.xlane.xlu1 %1253 }
 0x38a   : > { %v1264_v51 = vsub.f32 %v1108_v29, %v1254_v50 }
 0x38b   : > { %v1257_v52 = vpop.xlane.xlu0 %1256 }
 0x38c   : > { %v1268_v53 = vmul.f32 1.442695, %v1264_v51  ;;  %v1265_v54 = vsub.f32 %v1154_v35, %v1257_v52 }
 0x38e   : > { %2386 = vpow2.f32 %v1268_v53  ;;  %v1270_v55 = vmul.f32 1.442695, %v1265_v54 }
 0x390   : > { %2388 = vpow2.f32 %v1270_v55 }
 0x391   : > { %v1260_v10 = vpop.xlane.xlu0 %1259 }
 0x392   : > { %v1266_v61 = vsub.f32 %v1200_v42, %v1260_v10 }
 0x393   : > { %v1263_v6 = vpop.xlane.xlu1 %1262 }
 0x394   : > { %v1267_v60 = vsub.f32 %v1246_v46, %v1263_v6  ;;  %v1272_v63 = vmul.f32 1.442695, %v1266_v61 }
 0x396   : > { %v1274_v62 = vmul.f32 1.442695, %v1267_v60 }
 0x397   : > { %v900_v5 = vpop.permute.xlu1 %899 }
 0x398   : > { %v2387_v56 = vpop.eup %2386  ;;  %2390 = vpow2.f32 %v1274_v62  ;;  %v946_v13 = vrot.slane %v900_v5, %v2770_v20 }
 0x399   : > { %v1276_v57 = vsel %vm1067_vm2, %v2387_v56, 0.0  ;;  %2392 = vpow2.f32 %v1272_v63 }
 0x39a   : > { %v2389_v58 = vpop.eup %2388  ;;  %1277 = vadd.xlane.f32.xlu0 %v1276_v57 }
 0x39b   : > { %v1279_v59 = vsel %vm1067_vm2, %v2389_v58, 0.0 }
 0x39c   : > { %1280 = vadd.xlane.f32.xlu1 %v1279_v59 }
 0x3a2   : > { %v2872_v1 = vpop.eup %2390 }
 0x3a3   : > { %v2874_v2 = vpop.eup %2392  ;;  %v1285_v4 = vsel %vm1067_vm2, %v2872_v1, 0.0 }
 0x3ad   : > { %901 = vrot.lane.b32.xlu1 %v2766_v12, %s2562_s29  ;;  %v1282_v12 = vsel %vm1067_vm2, %v2874_v2, 0.0 }
 0x3b0   : > { %903 = vrot.lane.b32.xlu0 %v2764_v11, %s2562_s29  ;;  %v898_v11 = vpop.permute.xlu0 %897 }
 0x3b1   : > { %v912_v16 = vrot.slane %v898_v11, %v2770_v20 }
 0x3cf   : > { %1286 = vadd.xlane.f32.xlu0 %v1285_v4 }
 0x3d1   : > { %1283 = vadd.xlane.f32.xlu1 %v1282_v12 }
 0x427   : > { %v1278_v7 = vpop.xlane.xlu0 %1277 }
 0x428   : > { %2394 = vrcp.f32 %v1278_v7 }
 0x429   : > { %v1281_v8 = vpop.xlane.xlu1 %1280 }
 0x42a   : > { %2396 = vrcp.f32 %v1281_v8 }
 0x42b   : > { %v904_v9 = vpop.permute.xlu0 %903 }
 0x42c   : > { %v954_v14 = vrot.slane %v904_v9, %v2770_v20 }
 0x42d   : > { %v902_v15 = vpop.permute.xlu1 %901 }
 0x42e   : > { %v955_v17 = vcombine.low %v946_v13, %v954_v14  ;;  %v956_v18 = vcombine.high %v946_v13, %v954_v14  ;;  %v920_v19 = vrot.slane %v902_v15, %v2770_v20 }
 0x430   : > { %v963_v21 = vrot.slane %v955_v17, %v2780_v26  ;;  %v970_v22 = vrot.slane %v956_v18, %v2780_v26  ;;  %v921_v23 = vcombine.low %v912_v16, %v920_v19  ;;  %v922_v24 = vcombine.high %v912_v16, %v920_v19 }
 0x432   : > { %v2395_v25 = vpop.eup %2394  ;;  %v971_v27 = vcombine.high %v963_v21, %v2561_v37  ;;  %v972_v28 = vcombine.high %v970_v22, %v2561_v37  ;;  %v929_v30 = vrot.slane %v921_v23, %v2780_v26  ;;  %v936_v31 = vrot.slane %v922_v24, %v2780_v26 }
 0x433   : > { %v1292_v29 = vmul.f32 %v2395_v25, %v2387_v56  ;;  %v978_v35 = vshrl.u32 %v963_v21, 16  ;;  %v994_v38 = vshrl.u32 %v970_v22, 16 }
 0x434   : > { %v2397_v32 = vpop.eup %2396  ;;  %v986_v36 = vshrl.u32 %v971_v27, 16  ;;  %v1002_v39 = vshrl.u32 %v972_v28, 16  ;;  %v937_v41 = vcombine.high %v929_v30, %v2561_v37  ;;  %v938_v42 = vcombine.high %v936_v31, %v2561_v37 }
 0x435   : > { %v1293_v40 = vmul.f32 %v2397_v32, %v2389_v58  ;;  %v975_v43 = vpack.i.b16 %v963_v21, %v929_v30  ;;  %v977_v44 = vshrl.u32 %v929_v30, 16  ;;  %v991_v45 = vpack.i.b16 %v970_v22, %v936_v31 }
 0x436   : > { %v993_v46 = vshrl.u32 %v936_v31, 16  ;;  %v1296_v47 = vpack.c.bf16 %v1292_v29, %v1292_v29  ;;  %v983_v48 = vpack.i.b16 %v971_v27, %v937_v41  ;;  %v985_v49 = vshrl.u32 %v937_v41, 16 }
 0x437   : > { %v999_v33 = vpack.i.b16 %v972_v28, %v938_v42  ;;  %v1001_v34 = vshrl.u32 %v938_v42, 16  ;;  %v979_v50 = vpack.i.b16 %v978_v35, %v977_v44  ;;  %v1005_v52 = vcombine.low %v975_v43, %v991_v45 }
 0x438   : > { %v995_v51 = vpack.i.b16 %v994_v38, %v993_v46  ;;  %v1297_v53 = vpack.c.bf16 %v1293_v40, %v1293_v40  ;;  %1301 = vst.msk [vmem:[%s2896_s18] sm:$0xf] %vm1300_vm3, %v1296_v47  ;;  %v987_v54 = vpack.i.b16 %v986_v36, %v985_v49 }
 0x439   : > { %v1003_v55 = vpack.i.b16 %v1002_v39, %v1001_v34  ;;  %v1013_v56 = vcombine.low %v983_v48, %v999_v33  ;;  %v1012_v58 = vrot.slane %v1005_v52, %v2770_v20 }
 0x43a   : > { %v1030_v57 = vcombine.low %v979_v50, %v995_v51  ;;  %1302 = vst.msk [vmem:[%s2896_s18 + $0x4] sm:$0xf] %vm1300_vm3, %v1297_v53 }
 0x43b   : > { %v1038_v59 = vcombine.low %v987_v54, %v1003_v55  ;;  %v1020_v6 = vrot.slane %v1013_v56, %v2770_v20 }
 0x43c   : > { %v1037_v60 = vrot.slane %v1030_v57, %v2770_v20 }
 0x43d   : > { %v1021_v10 = vcombine.low %v1012_v58, %v1020_v6  ;;  %v1045_v61 = vrot.slane %v1038_v59, %v2770_v20 }
 0x43f   : > { %v1028_v62 = vrot.slane %v1021_v10, %v2780_v26  ;;  %v1046_v63 = vcombine.low %v1037_v60, %v1045_v61 }
 0x441   : > { %v1053_v4 = vrot.slane %v1046_v63, %v2780_v26  ;;  %v1029_v12 = vcombine.high %v1028_v62, %v2561_v37  ;;  %v1058_v5 = vshrl.u32 %v1028_v62, 16 }
 0x443   : > { %v1057_v11 = vpack.i.b16 %v1053_v4, %v1028_v62  ;;  %v1059_v7 = vshrl.u32 %v1053_v4, 16  ;;  %v1054_v8 = vcombine.high %v1053_v4, %v2561_v37  ;;  %v1064_v9 = vshrl.u32 %v1029_v12, 16 }
 0x445   : > { %v1310_v13 = vsel %vm1308_vm4, %v1057_v11, 0  ;;  %v1060_v14 = vpack.i.b16 %v1059_v7, %v1058_v5  ;;  %v1063_v15 = vpack.i.b16 %v1054_v8, %v1029_v12  ;;  %v1065_v16 = vshrl.u32 %v1054_v8, 16 }
 0x446   : > { %2238 = vmatpush3.bf16.msra.mxu1 %v1310_v13 }
 0x447   : > { %v1356_v17 = vsel %vm1308_vm4, %v1060_v14, 0  ;;  %2249 = vmatprep.subr.bf16.mxu1 %v2553_v0  ;;  %v1066_v18 = vpack.i.b16 %v1065_v16, %v1064_v9  ;;  %v1402_v19 = vsel %vm1308_vm4, %v1063_v15, 0 }
 0x448   : > { %2244 = vmatpush3.bf16.msra.mxu0 %v1356_v17 }
 0x449   : > { %2240 = vmatmul.mubr.msk.bf16.vlgmr.msra.gmra.mrb[8].mxu1 %vm1067_vm2, %v1296_v47  ;;  %2255 = vmatprep.subr.bf16.mxu0 %v2553_v0  ;;  %v1448_v21 = vsel %vm1308_vm4, %v1066_v18, 0 }
 0x44a   : > { %2250 = vmatpush3.bf16.msra.mxu1 %v1402_v19  ;;  %2251 = vmatprep.mubr.msk.bf16.mxu1 %vm2554_vm1, %v2553_v0 }
 0x44b   : > { %2246 = vmatmul.mubr.msk.bf16.vlgmr.msra.gmra.mrb[12].mxu0 %vm1067_vm2, %v1297_v53  ;;  %2261 = vmatprep.subr.bf16.mxu1 %v2553_v0 }
 0x44c   : > { %2256 = vmatpush3.bf16.msra.mxu0 %v1448_v21  ;;  %2257 = vmatprep.mubr.msk.bf16.mxu0 %vm2554_vm1, %v2553_v0 }
 0x44d   : > { %2269 = vmatprep.subr.bf16.mxu0 %v2553_v0 }
 0x45c   : > { %v1287_v22 = vpop.xlane.xlu0 %1286 }
 0x45d   : > { %2398 = vrcp.f32 %v1287_v22 }
 0x45e   : > { %v1284_v23 = vpop.xlane.xlu1 %1283 }
 0x45f   : > { %2400 = vrcp.f32 %v1284_v23 }
 0x467   : > { %v2399_v24 = vpop.eup %2398 }
 0x468   : > { %v1295_v25 = vmul.f32 %v2399_v24, %v2872_v1  ;;  %v2378_v1 = vld [vmem:[%s3100_s2] sm:$0xff]  }
 0x469   : > { %v2401_v27 = vpop.eup %2400 }
 0x46a   : > { %v1294_v28 = vmul.f32 %v2401_v27, %v2874_v2  ;;  %v1299_v29 = vpack.c.bf16 %v1295_v25, %v1295_v25 }
 0x46c   : > { %2258 = vmatmul.mubr.msk.bf16.vlgmr.msra.gmra.mrb[16].mxu0 %vm1067_vm2, %v1299_v29  ;;  %v1298_v30 = vpack.c.bf16 %v1294_v28, %v1294_v28  ;;  %1304 = vst.msk [vmem:[%s2896_s18 + $0xc] sm:$0xf] %vm1300_vm3, %v1299_v29 }
 0x46d   : > { %2273 = vmatprep.mubr.msk.bf16.mxu0 %vm2554_vm1, %v2553_v0 }
 0x46e   : > { %2252 = vmatmul.mubr.msk.bf16.vlgmr.msra.gmra.mrb[12].mxu1 %vm1067_vm2, %v1298_v30  ;;  %1303 = vst.msk [vmem:[%s2896_s18 + $0x8] sm:$0xf] %vm1300_vm3, %v1298_v30  ;;  %v2379_v30 = vld [vmem:[%s3100_s2 + $0x8] sm:$0xff]  }
 0x46f   : > { %2265 = vmatprep.mubr.msk.bf16.mxu1 %vm2554_vm1, %v2553_v0  ;;  %2262 = vmatpush3.bf16.msra.mxu1 %v2378_v1 }
 0x470   : > { %2263 = vmatprep.subr.bf16.mxu1 %v2553_v0 }
 0x473   : > { %2264 = vmatpush3.bf16.msra.mxu1 %v2379_v30 }
 0x474   : > { %2277 = vmatprep.subr.bf16.mxu1 %v2553_v0 }
 0x51c   : > { %v1346_v2 = vpop.f32.mrb[8].mxu1 }
 0x51d   : > { %v2241_v31 = vpop.f32.mrb[9].mxu1  ;;  %v1490_v43 = vpack.c.bf16 %v1346_v2, %v1346_v2 }
 0x51e   : > { %v1349_v32 = vpop.f32.mrb[10].mxu1  ;;  %v1392_v35 = vpop.f32.mrb[12].mxu0 }
 0x51f   : > { %v2242_v36 = vpop.f32.mrb[11].mxu1  ;;  %v2247_v38 = vpop.f32.mrb[13].mxu0  ;;  %v1524_v41 = vpack.c.bf16 %v1392_v35, %v1392_v35  ;;  %v1497_v52 = vrot.slane %v1490_v43, %v2770_v20 }
 0x520   : > { %v1395_v39 = vpop.f32.mrb[14].mxu0 }
 0x521   : > { %v2248_v40 = vpop.f32.mrb[15].mxu0  ;;  %v1531_v48 = vrot.slane %v1524_v41, %v2770_v20 }
 0x53f   : > { %v1484_v42 = vpop.f32.mrb[16].mxu0 }
 0x540   : > { %v1532_v44 = vpack.c.bf16 %v1484_v42, %v1484_v42  ;;  %v2259_v45 = vpop.f32.mrb[17].mxu0 }
 0x541   : > { %v1438_v46 = vpop.f32.mrb[12].mxu1  ;;  %v1487_v47 = vpop.f32.mrb[18].mxu0 }
 0x542   : > { %v1539_v49 = vrot.slane %v1532_v44, %v2770_v20  ;;  %v1498_v33 = vpack.c.bf16 %v1438_v46, %v1438_v46  ;;  %v2253_v34 = vpop.f32.mrb[13].mxu1  ;;  %v2260_v50 = vpop.f32.mrb[19].mxu0 }
 0x543   : > { %v1441_v51 = vpop.f32.mrb[14].mxu1  ;;  %v1667_v50 = vld [vmem:[#allocation2] sm:$0xff] }
 0x544   : > { %v1540_v53 = vcombine.low %v1531_v48, %v1539_v49  ;;  %v1541_v54 = vcombine.high %v1531_v48, %v1539_v49  ;;  %v1505_v55 = vrot.slane %v1498_v33, %v2770_v20  ;;  %v2254_v56 = vpop.f32.mrb[15].mxu1 }
 0x546   : > { %v1548_v57 = vrot.slane %v1540_v53, %v2780_v26  ;;  %v1555_v58 = vrot.slane %v1541_v54, %v2780_v26  ;;  %v1506_v59 = vcombine.low %v1497_v52, %v1505_v55  ;;  %v1507_v6 = vcombine.high %v1497_v52, %v1505_v55 }
 0x548   : > { %v1556_v10 = vcombine.high %v1548_v57, %v2561_v37  ;;  %v1514_v60 = vrot.slane %v1506_v59, %v2780_v26  ;;  %v1521_v61 = vrot.slane %v1507_v6, %v2780_v26  ;;  %v1557_v62 = vcombine.high %v1555_v58, %v2561_v37 }
 0x549   : > { %v1563_v63 = vshrl.u32 %v1548_v57, 16  ;;  %v1579_v8 = vshrl.u32 %v1555_v58, 16 }
 0x54a   : > { %v1522_v4 = vcombine.high %v1514_v60, %v2561_v37  ;;  %v1523_v12 = vcombine.high %v1521_v61, %v2561_v37  ;;  %v1560_v11 = vpack.i.b16 %v1548_v57, %v1514_v60  ;;  %v1562_v5 = vshrl.u32 %v1514_v60, 16 }
 0x54b   : > { %v1571_v7 = vshrl.u32 %v1556_v10, 16  ;;  %v1576_v9 = vpack.i.b16 %v1555_v58, %v1521_v61  ;;  %v1578_v13 = vshrl.u32 %v1521_v61, 16  ;;  %v1587_v18 = vshrl.u32 %v1557_v62, 16 }
 0x54c   : > { %v1564_v14 = vpack.i.b16 %v1563_v63, %v1562_v5  ;;  %v1568_v15 = vpack.i.b16 %v1556_v10, %v1522_v4  ;;  %v1570_v16 = vshrl.u32 %v1522_v4, 16  ;;  %v1584_v17 = vpack.i.b16 %v1557_v62, %v1523_v12  ;;  %v2380_v62 = vld [vmem:[#allocation3] sm:$0xff]   ;;  %v2381_v63 = vld [vmem:[#allocation3 + $0x8] sm:$0xff]  }
 0x54d   : > { %v1580_v19 = vpack.i.b16 %v1579_v8, %v1578_v13  ;;  %v1586_v21 = vshrl.u32 %v1523_v12, 16  ;;  %v1590_v22 = vcombine.low %v1560_v11, %v1576_v9  ;;  %2270 = vmatpush3.bf16.msra.mxu0 %v2380_v62  ;;  %v2383_v4 = vld [vmem:[%s3105_s7 + $0x8] sm:$0xff]   ;;  %v2153_v8 = vld [vmem:[%s3101_s3] ss:$0 sm:$0xff] }
 0x54e   : > { %v1572_v23 = vpack.i.b16 %v1571_v7, %v1570_v16  ;;  %v1598_v24 = vcombine.low %v1568_v15, %v1584_v17  ;;  %2271 = vmatprep.subr.bf16.mxu0 %v2553_v0  ;;  %v2154_v13 = vld [vmem:[%s3102_s4] ss:$0 sm:$0xff]  ;;  %v2384_v17 = vld [vmem:[%s3105_s7 + $0x10] sm:$0xff]  }
 0x54f   : > { %v1588_v25 = vpack.i.b16 %v1587_v18, %v1586_v21  ;;  %v1615_v27 = vcombine.low %v1564_v14, %v1580_v19  ;;  %v1597_v28 = vrot.slane %v1590_v22, %v2770_v20  ;;  %v2385_v18 = vld [vmem:[%s3105_s7 + $0x18] sm:$0xff]   ;;  %v2155_v19 = vld [vmem:[%s3104_s6] ss:$0 sm:$0xff] }
 0x550   : > { %v1605_v29 = vrot.slane %v1598_v24, %v2770_v20 }
 0x551   : > { %v1623_v1 = vcombine.low %v1572_v23, %v1588_v25  ;;  %v1622_v31 = vrot.slane %v1615_v27, %v2770_v20  ;;  %2272 = vmatpush3.bf16.msra.mxu0 %v2381_v63 }
 0x552   : > { %v1606_v2 = vcombine.low %v1597_v28, %v1605_v29 }
 0x553   : > { %v1630_v32 = vrot.slane %v1623_v1, %v2770_v20 }
 0x554   : > { %v1613_v35 = vrot.slane %v1606_v2, %v2780_v26 }
 0x555   : > { %v1631_v36 = vcombine.low %v1622_v31, %v1630_v32 }
 0x556   : > { %v1614_v39 = vcombine.high %v1613_v35, %v2561_v37  ;;  %v1643_v40 = vshrl.u32 %v1613_v35, 16 }
 0x557   : > { %v1638_v38 = vrot.slane %v1631_v36, %v2780_v26 }
 0x558   : > { %v1649_v46 = vshrl.u32 %v1614_v39, 16 }
 0x559   : > { %v1644_v41 = vshrl.u32 %v1638_v38, 16  ;;  %v1639_v42 = vcombine.high %v1638_v38, %v2561_v37  ;;  %v1642_v43 = vpack.i.b16 %v1638_v38, %v1613_v35 }
 0x55b   : > { %v1645_v44 = vpack.i.b16 %v1644_v41, %v1643_v40  ;;  %v1648_v45 = vpack.i.b16 %v1639_v42, %v1614_v39  ;;  %v1650_v47 = vshrl.u32 %v1639_v42, 16 }
 0x55d   : > { %1652 = vrot.lane.b32.xlu0 %v1645_v44, %s2563_s30  ;;  %1654 = vrot.lane.b32.xlu1 %v1648_v45, %s2564_s14  ;;  %v1651_v20 = vpack.i.b16 %v1650_v47, %v1649_v46  ;;  %s1980_s14 = sshll.u32 %s2896_s18, 4  ;;  %s2438_s30 = sshll.u32 %s2566_s25, 4  ;;  %s3005_s14 = int_to_ptr.vmem [resolvable:$true] %s1980_s14  ;;  %s2439_s30 = int_to_ptr.vmem [resolvable:$false] %s2438_s30 }
 0x55e   : > { %s2434_s19 = scalar_lea.vmem %s3005_s14, 256  ;;  %s2440_s18 = scalar_lea.vmem %s2439_s30, 512 }
 0x55f   : > { %p2435_p8 = scmp.ne.s32.totalorder %s3005_s14, %s2434_s19  ;;  %p2441_p1 = scmp.lt.s32.totalorder %s3005_s14, %s2439_s30 }
 0x560   : > { %p2442_p3 = scmp.lt.s32.totalorder %s2440_s18, %s2434_s19 }
 0x561   : > { %1656 = vrot.lane.b32.xlu1 %v1651_v20, %s2565_s27  ;;  %s2174_s27 = sshll.u32 %s2540_s24, 8  ;;  %p2436_p11 = pnand %p2435_p8, %p3131_p10 }
 0x562   : > { %s3010_s20 = scalar_lea.hbm %s3110_s12, %s2174_s27  ;;  %p2443_p5 = por %p2442_p3, %p2441_p1 }
 0x563   : > { %p2437_p13 = pneg %p2436_p11 }
 0x565   : > { %p2444_p6 = pnand %p2443_p5, %p2437_p13 }
 0x5cf   : > { %v1653_v48 = vpop.permute.xlu0 %1652  ;;  %v1655_v26 = vpop.permute.xlu1 %1654 }
 0x5d0   : > { %v1660_v49 = vsel %vm1067_vm2, %v1642_v43, %v1653_v48 }
 0x5d1   : > { %v1663_v33 = vsel %vm1661_vm5, %v1660_v49, %v1655_v26 }
 0x5d3   : > { %v1657_v37 = vpop.permute.xlu1 %1656 }
 0x5d4   : > { %v1666_v34 = vsel %vm1664_vm6, %v1663_v33, %v1657_v37 }
 0x5d5   : > { %2266 = vmatmul.mubr.msk.bf16.vlgmr.msra.gmra.mrb[16].mxu1 %vm494_vm0, %v1666_v34 }
 0x5d6   : > { %2285 = vmatprep.mubr.msk.bf16.mxu1 %vm2554_vm1, %v2553_v0 }
 0x6a8   : > { %v1720_v51 = vpop.f32.mrb[16].mxu1 }
 0x6a9   : > { %v1726_v52 = vadd.f32 %v1720_v51, %v1667_v50  ;;  %v2267_v53 = vpop.f32.mrb[17].mxu1 }
 0x6aa   : > { %v1723_v54 = vpop.f32.mrb[18].mxu1 }
 0x6ab   : > { %1727 = vst.msk [vmem:[#allocation2] sm:$0xff] %vm494_vm0, %v1726_v52  ;;  %v2268_v55 = vpop.f32.mrb[19].mxu1 }
 0x6b2   : > { %v1731_v56 = vld [vmem:[#allocation2] sm:$0xff] }
 0x6b3   : > { %v1732_v57 = vadd.f32 %v1731_v56, %v2746_v3  ;;  %v2382_v3 = vld [vmem:[%s3105_s7] sm:$0xff]  }
 0x6b4   : > { %2278 = vmatpush3.bf16.msra.mxu1 %v2382_v3 }
 0x6b5   : > { %v1735_v58 = vsel %vm494_vm0, %v1732_v57, 0.0  ;;  %2279 = vmatprep.subr.bf16.mxu1 %v2553_v0 }
 0x6b6   : > { %1736 = vadd.xlane.f32.xlu0 %v1735_v58 }
 0x6b8   : > { %2280 = vmatpush3.bf16.msra.mxu1 %v2383_v4 }
 0x6b9   : > { %2281 = vmatprep.subr.bf16.mxu1 %v2553_v0 }
 0x6bc   : > { %2282 = vmatpush3.bf16.msra.mxu1 %v2384_v17 }
 0x6bd   : > { %2283 = vmatprep.subr.bf16.mxu1 %v2553_v0  ;;  %v2159_v0 = vld [vmem:[%s3106_s8] ss:$0 sm:$0xff] }
 0x6c0   : > { %2284 = vmatpush3.bf16.msra.mxu1 %v2385_v18 }
 0x743   : > { %v1737_v59 = vpop.xlane.xlu0 %1736 }
 0x744   : > { %v1739_v6 = vmul.f32 0.03125, %v1737_v59 }
 0x746   : > { %v1740_v10 = vsub.f32 %v1732_v57, %v1739_v6 }
 0x748   : > { %v1741_v60 = vmul.f32 %v1740_v10, %v1740_v10 }
 0x74a   : > { %v1742_v61 = vsel %vm494_vm0, %v1741_v60, 0.0 }
 0x74b   : > { %1743 = vadd.xlane.f32.xlu1 %v1742_v61 }
 0x7d8   : > { %v1744_v12 = vpop.xlane.xlu1 %1743 }
 0x7d9   : > { %v1745_v11 = vmul.f32 0.03125, %v1744_v12 }
 0x7db   : > { %v1746_v5 = vadd.f32 1e-06, %v1745_v11 }
 0x7dd   : > { %2402 = vrsqrt.f32 %v1746_v5 }
 0x7e7   : > { %v2403_v7 = vpop.eup %2402 }
 0x7e8   : > { %v1748_v9 = vmul.f32 %v2403_v7, %v1740_v10 }
 0x7ea   : > { %v1755_v14 = vmul.f32 %v2153_v8, %v1748_v9 }
 0x7ec   : > { %v1762_v15 = vadd.f32 %v2154_v13, %v1755_v14 }
 0x7ee   : > { %v1763_v16 = vpack.c.bf16 %v1762_v15, %v1762_v15 }
 0x7f0   : > { %2274 = vmatmul.mubr.msk.bf16.vlgmr.msra.gmra.mrb[20].mxu0 %vm494_vm0, %v1763_v16 }
 0x8c3   : > { %v1824_v21 = vpop.f32.mrb[20].mxu0 }
 0x8c4   : > { %v1825_v22 = vadd.f32 %v2155_v19, %v1824_v21  ;;  %v2275_v23 = vpop.f32.mrb[21].mxu0 }
 0x8c5   : > { %v1827_v24 = vpop.f32.mrb[22].mxu0 }
 0x8c6   : > { %v1830_v25 = vmax.f32 %v1825_v22, 0.0  ;;  %v2276_v27 = vpop.f32.mrb[23].mxu0 }
 0x8c8   : > { %v1831_v28 = vpack.c.bf16 %v1830_v25, %v1830_v25 }
 0x8ca   : > { %2286 = vmatmul.mubr.msk.bf16.vlgmr.msra.gmra.mrb[20].mxu1 %vm1871_vm7, %v1831_v28 }
 0x99d   : > { %v1909_v29 = vpop.f32.mrb[20].mxu1 }
 0x99e   : > { %v1910_v30 = vadd.f32 %v2159_v0, %v1909_v29  ;;  %v2287_v1 = vpop.f32.mrb[21].mxu1 }
 0x99f   : > { %v1912_v2 = vpop.f32.mrb[22].mxu1 }
 0x9a0   : > { %v2288_v31 = vpop.f32.mrb[23].mxu1  ;;  %v1915_v32 = vadd.f32 %v1910_v30, %v1762_v15 }
 0x9a2   : > { %v1918_v35 = vsel %vm494_vm0, %v1915_v32, 0.0 }
 0x9a3   : > { %1919 = vadd.xlane.f32.xlu0 %v1918_v35 }
 0xa30   : > { %v1920_v36 = vpop.xlane.xlu0 %1919 }
 0xa31   : > { %v1921_v38 = vmul.f32 0.03125, %v1920_v36 }
 0xa33   : > { %v1922_v39 = vsub.f32 %v1915_v32, %v1921_v38 }
 0xa35   : > { %v1923_v40 = vmul.f32 %v1922_v39, %v1922_v39 }
 0xa37   : > { %v1924_v41 = vsel %vm494_vm0, %v1923_v40, 0.0 }
 0xa38   : > { %1925 = vadd.xlane.f32.xlu0 %v1924_v41 }
 0xa39   : > { %2447 = shalt.err (!%p2444_p6)
}
 0xa3a   : > { %s2448_s27 = scalar_lea.hbm %s3010_s20, 256  ;;  %s2452_s25 = scalar_lea.hbm %s3110_s12, 512 }
 0xa3b   : > { %p2449_p7 = scmp.ne.s32.totalorder %s3010_s20, %s2448_s27  ;;  %p2453_p0 = scmp.lt.u32.totalorder %s3010_s20, %s3110_s12 }
 0xa3c   : > { %p2454_p2 = scmp.lt.u32.totalorder %s2452_s25, %s2448_s27  ;;  %p2456_p8 = scmp.lt.u32.totalorder %s2448_s27, %s3010_s20 }
 0xa3d   : > { %p2450_p9 = pnand %p2449_p7, %p3131_p10 }
 0xa3e   : > { %p2455_p4 = por %p2454_p2, %p2453_p0 }
 0xa3f   : > { %p2451_p12 = pneg %p2450_p9 }
 0xa40   : > { %p2457_p11 = por %p2456_p8, %p2455_p4 }
 0xa42   : > { %p2458_p13 = pnand %p2457_p11, %p2451_p12 }
 0xa44   : > { %2461 = shalt.err (!%p2458_p13)
}
 0xa45   : > { %s2567_s19 = smov 4   ;;  %s3132_s18 = scalar_lea.sflag [#allocation8], %s2885_s16  ;;  %v2165_v46 = vld [vmem:[%s3107_s9] ss:$0 sm:$0xff] }
 0xa46   : > { %2294 = dma.vmem_to_hbm [thread:$0]  (%p3131_p10), %s3005_s14, 256, %s3010_s20, %s3132_s18, %s2562_s29, %s2562_s29, %s2567_s19  }
 0xa47   : > { %s2136_s28 = sshll.u32 %s2885_s16, 3  ;;  %v2166_v20 = vld [vmem:[%s3108_s10] ss:$0 sm:$0xff]  ;;  %s2169_s30 = sshll.u32 %s2540_s24, 7 }
 0xa48   : > { %s466_s0 = scalar_lea.vmem [#allocation6], %s2136_s28  ;;  %s3049_s19 = scalar_lea.hbm %s3109_s11, %s2169_s30 }
 0xa49   : > { %s1965_s29 = sshll.u32 %s466_s0, 4  ;;  %s1947_s18 = scalar_lea.sflag [#allocation5], %s2885_s16  ;;  %s3051_s29 = int_to_ptr.vmem [resolvable:$true] %s1965_s29 }
 0xa4a   : > { %s2462_s27 = scalar_lea.vmem %s3051_s29, 128  ;;  %s2568_s24 = smov [#allocation6]  }
 0xa4b   : > { %p2463_p1 = scmp.ne.s32.totalorder %s3051_s29, %s2462_s27  ;;  %s2466_s28 = sshll.u32 %s2568_s24, 4  ;;  %s2467_s28 = int_to_ptr.vmem [resolvable:$false] %s2466_s28 }
 0xa4c   : > { %s2468_s23 = scalar_lea.vmem %s2467_s28, 256  ;;  %p2469_p6 = scmp.lt.s32.totalorder %s3051_s29, %s2467_s28 }
 0xa4d   : > { %p2464_p3 = pnand %p2463_p1, %p3131_p10  ;;  %p2470_p7 = scmp.lt.s32.totalorder %s2468_s23, %s2462_s27 }
 0xa4f   : > { %p2465_p5 = pneg %p2464_p3  ;;  %p2471_p9 = por %p2470_p7, %p2469_p6 }
 0xa51   : > { %p2472_p12 = pnand %p2471_p9, %p2465_p5 }
 0xac5   : > { %v1926_v42 = vpop.xlane.xlu0 %1925 }
 0xac6   : > { %v1927_v43 = vmul.f32 0.03125, %v1926_v42 }
 0xac8   : > { %v1928_v44 = vadd.f32 1e-06, %v1927_v43 }
 0xaca   : > { %2404 = vrsqrt.f32 %v1928_v44 }
 0xad4   : > { %v2405_v45 = vpop.eup %2404 }
 0xad5   : > { %v1930_v47 = vmul.f32 %v2405_v45, %v1922_v39 }
 0xad7   : > { %v1937_v48 = vmul.f32 %v2165_v46, %v1930_v47 }
 0xad9   : > { %v1944_v26 = vadd.f32 %v2166_v20, %v1937_v48 }
 0xadb   : > { %1945 = vst.msk [vmem:[%s466_s0] sm:$0xff] %vm494_vm0, %v1944_v26 }
 0xadc   : > { %2475 = shalt.err (!%p2472_p12)
}
 0xadd   : > { %s2476_s0 = scalar_lea.hbm %s3049_s19, 128  ;;  %s2480_s25 = scalar_lea.hbm %s3109_s11, 256 }
 0xade   : > { %p2477_p0 = scmp.ne.s32.totalorder %s3049_s19, %s2476_s0  ;;  %p2481_p8 = scmp.lt.u32.totalorder %s3049_s19, %s3109_s11 }
 0xadf   : > { %p2482_p11 = scmp.lt.u32.totalorder %s2480_s25, %s2476_s0  ;;  %p2484_p1 = scmp.lt.u32.totalorder %s2476_s0, %s3049_s19 }
 0xae0   : > { %p2478_p2 = pnand %p2477_p0, %p3131_p10 }
 0xae1   : > { %p2483_p13 = por %p2482_p11, %p2481_p8 }
 0xae2   : > { %p2479_p4 = pneg %p2478_p2 }
 0xae3   : > { %p2485_p3 = por %p2484_p1, %p2483_p13 }
 0xae5   : > { %p2486_p5 = pnand %p2485_p3, %p2479_p4 }
 0xae7   : > { %2489 = shalt.err (!%p2486_p5)
}
 0xae8   : > { %2293 = dma.vmem_to_hbm [thread:$0]  (%p3131_p10), %s3051_s29, 128, %s3049_s19, %s1947_s18  }
 0xae9 PF: > { %p2310_p6 = scmp.ge.s32.totalorder %s2548_s26, 2  ;;  %s1995_s20 = sand.u32 1, %s2528_s21  }
 0xaea   : > { %p3133_p7 = scmp.ne.s32.totalorder %s3123_s15, 0  ;;  %s1996_s27 = scalar_lea.sflag [#allocation5], %s1995_s20 }
 0xaec   : > { %p2302_p9 = pnand %p2310_p6, %p3133_p7 }
 0xaee   : > { %2519 = dma.done.wait (!%p2302_p9), %s1996_s27, 128  }
 0xaef   : > { %2521 = vsyncadd (!%p2302_p9), %s1996_s27, 4294967168  ;;  %s2005_s24 = scalar_lea.sflag [#allocation8], %s1995_s20 }
 0xaf0   : > { %2523 = dma.done.wait (!%p2302_p9), %s2005_s24, 256  }
 0xaf1   : > { %2525 = vsyncadd (!%p2302_p9), %s2005_s24, 4294967040  ;;  %s30_s26 = sadd.s32 1, %s2548_s26   ;;  %s3134_s13 = sld [smem:[#allocation12_spill]] }
 0xaf2   : > { %p27_p12 = scmp.ge.s32.totalorder %s30_s26, 4   ;;  %s3135_s23 = sld [smem:[#allocation15_spill]] }
 0xaf3   : > { %s3136_s24 = sld [smem:[#allocation13_spill]]  ;;  %s3137_s25 = sld [smem:[#allocation14_spill]] }
 0xaf4   : > { %s3138_s21 = smov %s2532_s22  ;;  %29 = sbr.rel (!%p27_p12) target bundleno = 9 (0x9), region = 135 }
 0xaf7   : > { %s3139_s22 = smov %s3134_s13 }
 0xafb   :  { %2010 = vsyncpa [#allocation4], 1 }
 0xafc   :  { %2012 = vsyncpa [#allocation4 + $0x1], 1 }
 0xafd   :  { %2013 = vsyncpa [#allocation5], 1 }
 0xafe   :  { %2015 = vsyncpa [#allocation5 + $0x1], 1 }
 0xaff   :  { %2016 = vsyncpa [#allocation8], 1 }
 0xb00   :  { %2018 = vsyncpa [#allocation8 + $0x1], 1 }

</bundles_post_ra>
